<compile_context>
chip_gen: v7x
topology: tpu7x:2x2x1
jax: 0.10.0
libtpu: 0.0.40
codegen_flags: <defaults>
</compile_context>

<pallas_src>
import math

import jax
import jax.numpy as jnp
from jax import lax
from jax.experimental import pallas as pl
from jax.experimental.pallas import tpu as pltpu

# ------------------------- model hyper-parameters (small ViT) -------------------------
BATCH = 2
IN_CH = 3
IMG = 32
PATCH = 16                      # vit_b_16 patch size
HIDDEN = 128                    # (768 in vit_b_16; scaled down)
NUM_HEADS = 4
HEAD_DIM = HIDDEN // NUM_HEADS
MLP_DIM = 256                   # (3072 in vit_b_16; scaled down)
NUM_LAYERS = 2                  # (12 in vit_b_16; scaled down)
NUM_CLASSES = 4                 # ViTModel replaces the head with Linear(_, 4)
NUM_PATCHES = (IMG // PATCH) ** 2
SEQ = NUM_PATCHES + 1           # +1 for class token (= 5)
S_PAD = 8                       # tokens per batch padded to a sublane multiple
ROWS = BATCH * S_PAD            # 16 activation rows resident in VMEM
PATCH_DIM = IN_CH * PATCH * PATCH   # 768
HEAD_PAD = 128                  # classifier output padded to a full lane group
LOGIT_ROWS = 8                  # sublane-padded logits rows
LN_EPS = 1e-6                   # torchvision ViT uses LayerNorm(eps=1e-6)
ATTN_SCALE = 1.0 / math.sqrt(HEAD_DIM)
INV_SQRT2 = 0.7071067811865476


# --------------------------------- in-kernel helpers ----------------------------------
def _ln(x, g, b, eps=LN_EPS):
    mean = jnp.mean(x, axis=-1, keepdims=True)
    var = jnp.mean(jnp.square(x - mean), axis=-1, keepdims=True)
    return (x - mean) * lax.rsqrt(var + eps) * g + b


def _gelu(x):
    # exact (erf-based) GELU, matching torch.nn.GELU(approximate='none')
    return 0.5 * x * (1.0 + lax.erf(x * INV_SQRT2))


def _mm(x_f32, w_bf16, b_f32):
    # bf16 MXU inputs, f32 accumulation, f32 bias add
    return jnp.dot(x_f32.astype(jnp.bfloat16), w_bf16,
                   preferred_element_type=jnp.float32) + b_f32


# ----------------------------------- fused kernel --------------------------------------
def fused_vit_kernel(patches_ref, patch_w_ref, patch_b_ref, cls_pos_ref,
                     lnp_ref, qkv_w_ref, qkv_b_ref, out_w_ref, out_b_ref,
                     fc1_w_ref, fc1_b_ref, fc2_w_ref, fc2_b_ref,
                     lnf_ref, head_w_ref, head_b_ref,
                     logits_ref, z_ref):
    layer = pl.program_id(0)

    # --- patch embedding + class token + positional embedding (first grid step only) ---
    @pl.when(layer == 0)
    def _embed():
        tok = _mm(patches_ref[...], patch_w_ref[...], patch_b_ref[...])  # (B*NP, D)
        cls_pos = cls_pos_ref[...]                                       # (S_PAD, D)
        pad_top = jnp.zeros((1, HIDDEN), jnp.float32)                    # cls slot
        pad_bot = jnp.zeros((S_PAD - SEQ, HIDDEN), jnp.float32)          # pad rows
        blocks = []
        for b in range(BATCH):
            tok_b = tok[b * NUM_PATCHES:(b + 1) * NUM_PATCHES]
            blocks.append(cls_pos + jnp.concatenate([pad_top, tok_b, pad_bot], axis=0))
        z_ref[...] = jnp.concatenate(blocks, axis=0)                     # (ROWS, D)

    # ---------------- one transformer encoder block per grid step ----------------------
    z = z_ref[...]                                                       # (ROWS, D) f32
    lnp = lnp_ref[0]                                                     # (4, D)
    ln1_g, ln1_b = lnp[0:1, :], lnp[1:2, :]
    ln2_g, ln2_b = lnp[2:3, :], lnp[3:4, :]

    # pre-LN + fused QKV projection (single N=384 matmul)
    y = _ln(z, ln1_g, ln1_b)
    qkv = _mm(y, qkv_w_ref[0], qkv_b_ref[0])                             # (ROWS, 3D)

    # padded key positions must not receive attention mass
    key_mask = lax.broadcasted_iota(jnp.int32, (1, S_PAD), 1) < SEQ      # (1, S_PAD)

    # all (batch, head) pairs in one grid step, unrolled; heads written lane-contiguous
    attn_rows = []
    for b in range(BATCH):
        r0 = b * S_PAD
        head_outs = []
        for h in range(NUM_HEADS):
            c = h * HEAD_DIM
            qh = qkv[r0:r0 + S_PAD, c:c + HEAD_DIM]
            kh = qkv[r0:r0 + S_PAD, HIDDEN + c:HIDDEN + c + HEAD_DIM]
            vh = qkv[r0:r0 + S_PAD, 2 * HIDDEN + c:2 * HIDDEN + c + HEAD_DIM]
            s = lax.dot_general(qh.astype(jnp.bfloat16), kh.astype(jnp.bfloat16),
                                (((1,), (1,)), ((), ())),
                                preferred_element_type=jnp.float32) * ATTN_SCALE
            s = jnp.where(key_mask, s, -1e30)
            s = s - jnp.max(s, axis=-1, keepdims=True)
            p = jnp.exp(s)
            p = p * pl.reciprocal(jnp.sum(p, axis=-1, keepdims=True), approx=True)
            head_outs.append(jnp.dot(p.astype(jnp.bfloat16), vh.astype(jnp.bfloat16),
                                     preferred_element_type=jnp.float32))
        attn_rows.append(jnp.concatenate(head_outs, axis=-1))            # (S_PAD, D)
    attn = jnp.concatenate(attn_rows, axis=0)                            # (ROWS, D)

    # out-projection + residual 1
    z = z + _mm(attn, out_w_ref[0], out_b_ref[0])
    # TODO(synk): dropout layers are identity here (torchvision default p=0.0 / eval)

    # pre-LN MLP + residual 2
    y = _ln(z, ln2_g, ln2_b)
    hmid = _gelu(_mm(y, fc1_w_ref[0], fc1_b_ref[0]))
    z = z + _mm(hmid, fc2_w_ref[0], fc2_b_ref[0])
    z_ref[...] = z

    # --- final LN, class-token readout, classifier head (last grid step only) ----------
    @pl.when(layer == pl.num_programs(0) - 1)
    def _head():
        g, bia = lnf_ref[0:1, :], lnf_ref[1:2, :]
        cls_rows = jnp.concatenate(
            [z[bb * S_PAD:bb * S_PAD + 1, :] for bb in range(BATCH)], axis=0)  # (B, D)
        cls_ln = _ln(cls_rows, g, bia)
        logits = _mm(cls_ln, head_w_ref[...], head_b_ref[...])                 # (B, 128)
        logits_ref[...] = jnp.concatenate(
            [logits, jnp.zeros((LOGIT_ROWS - BATCH, HEAD_PAD), jnp.float32)], axis=0)


# --------------------------------- parameter creation ----------------------------------
def init_params(key):
    keys = iter(jax.random.split(key, 16))

    def nrm(shape, dtype=jnp.float32, scale=0.02):
        return (scale * jax.random.normal(next(keys), shape)).astype(dtype)

    ln_block = jnp.stack([jnp.ones((HIDDEN,), jnp.float32),
                          jnp.zeros((HIDDEN,), jnp.float32),
                          jnp.ones((HIDDEN,), jnp.float32),
                          jnp.zeros((HIDDEN,), jnp.float32)])            # (4, D)

    params = {
        # Conv2d(IN_CH, HIDDEN, kernel=PATCH, stride=PATCH) as matmul weight (C*P*P, D)
        "patch_w": nrm((PATCH_DIM, HIDDEN), jnp.bfloat16),
        "patch_b": jnp.zeros((1, HIDDEN), jnp.float32),
        "cls_token": nrm((1, HIDDEN)),
        "pos_emb": nrm((SEQ, HIDDEN)),
        # per-layer params stacked along a leading layer axis (streamed by index_map)
        "lnp": jnp.tile(ln_block[None], (NUM_LAYERS, 1, 1)),             # ln1_g,ln1_b,ln2_g,ln2_b
        "qkv_w": nrm((NUM_LAYERS, HIDDEN, 3 * HIDDEN), jnp.bfloat16),    # cols = [q|k|v]
        "qkv_b": jnp.zeros((NUM_LAYERS, 1, 3 * HIDDEN), jnp.float32),
        "out_w": nrm((NUM_LAYERS, HIDDEN, HIDDEN), jnp.bfloat16),
        "out_b": jnp.zeros((NUM_LAYERS, 1, HIDDEN), jnp.float32),
        "fc1_w": nrm((NUM_LAYERS, HIDDEN, MLP_DIM), jnp.bfloat16),
        "fc1_b": jnp.zeros((NUM_LAYERS, 1, MLP_DIM), jnp.float32),
        "fc2_w": nrm((NUM_LAYERS, MLP_DIM, HIDDEN), jnp.bfloat16),
        "fc2_b": jnp.zeros((NUM_LAYERS, 1, HIDDEN), jnp.float32),
        "lnf": jnp.stack([jnp.ones((HIDDEN,), jnp.float32),
                          jnp.zeros((HIDDEN,), jnp.float32)]),           # (2, D)
        "head_w": nrm((HIDDEN, NUM_CLASSES), jnp.bfloat16),
        "head_b": jnp.zeros((NUM_CLASSES,), jnp.float32),
    }
    return params


# ------------------------------------ forward pass -------------------------------------
def _const_spec(*shape):
    zeros = (0,) * len(shape)
    return pl.BlockSpec(shape, lambda l: zeros)


def _layer_spec(*tail):
    tail_zeros = (0,) * len(tail)
    return pl.BlockSpec((1,) + tail, lambda l: (l,) + tail_zeros)


@jax.jit
def vit_forward(params, x):
    """x: (B, C, H, W) float32 NCHW.  Returns logits (B, NUM_CLASSES)."""
    B, C, H, W = x.shape
    nh, nw = H // PATCH, W // PATCH

    # Conv2d(stride=kernel=PATCH) as patchify; channel-major per patch (matches Conv2d
    # weight layout flattened as (C, P, P)).  Plain-JAX glue on the input only.
    patches = x.reshape(B, C, nh, PATCH, nw, PATCH).transpose(0, 2, 4, 1, 3, 5)
    patches = patches.reshape(B * nh * nw, C * PATCH * PATCH)            # (B*NP, 768)

    # cls+pos layout for one batch: [cls+pos0, pos1..pos4, zero pad rows] (one-time glue)
    cls_pos = jnp.concatenate([
        params["cls_token"] + params["pos_emb"][0:1],
        params["pos_emb"][1:SEQ],
        jnp.zeros((S_PAD - SEQ, HIDDEN), jnp.float32),
    ], axis=0)                                                            # (S_PAD, D)

    # lane-dense classifier head: pad output columns to 128 (slice logits outside)
    head_w = jnp.pad(params["head_w"], ((0, 0), (0, HEAD_PAD - NUM_CLASSES)))
    head_b = jnp.pad(params["head_b"].reshape(1, NUM_CLASSES),
                     ((0, 0), (0, HEAD_PAD - NUM_CLASSES)))

    logits_pad = pl.pallas_call(
        fused_vit_kernel,
        out_shape=jax.ShapeDtypeStruct((LOGIT_ROWS, HEAD_PAD), jnp.float32),
        grid=(NUM_LAYERS,),
        in_specs=[
            _const_spec(B * NUM_PATCHES, PATCH_DIM),   # patches
            _const_spec(PATCH_DIM, HIDDEN),            # patch_w
            _const_spec(1, HIDDEN),                    # patch_b
            _const_spec(S_PAD, HIDDEN),                # cls_pos
            _layer_spec(4, HIDDEN),                    # lnp
            _layer_spec(HIDDEN, 3 * HIDDEN),           # qkv_w
            _layer_spec(1, 3 * HIDDEN),                # qkv_b
            _layer_spec(HIDDEN, HIDDEN),               # out_w
            _layer_spec(1, HIDDEN),                    # out_b
            _layer_spec(HIDDEN, MLP_DIM),              # fc1_w
            _layer_spec(1, MLP_DIM),                   # fc1_b
            _layer_spec(MLP_DIM, HIDDEN),              # fc2_w
            _layer_spec(1, HIDDEN),                    # fc2_b
            _const_spec(2, HIDDEN),                    # lnf
            _const_spec(HIDDEN, HEAD_PAD),             # head_w (padded)
            _const_spec(1, HEAD_PAD),                  # head_b (padded)
        ],
        out_specs=_const_spec(LOGIT_ROWS, HEAD_PAD),
        scratch_shapes=[pltpu.VMEM((ROWS, HIDDEN), jnp.float32)],
        compiler_params=pltpu.CompilerParams(
            # layer axis carries the activation state -> sequential
            dimension_semantics=("arbitrary",)),
    )(patches, params["patch_w"], params["patch_b"], cls_pos,
      params["lnp"], params["qkv_w"], params["qkv_b"],
      params["out_w"], params["out_b"],
      params["fc1_w"], params["fc1_b"], params["fc2_w"], params["fc2_b"],
      params["lnf"], head_w, head_b)

    return logits_pad[:B, :NUM_CLASSES]


# ---------------------------------------- main ------------------------------------------
if __name__ == "__main__":
    key = jax.random.PRNGKey(0)
    pkey, xkey = jax.random.split(key)
    params = init_params(pkey)
    x = jax.random.normal(xkey, (BATCH, IN_CH, IMG, IMG), dtype=jnp.float32)

    logits = vit_forward(params, x)
    logits = jax.block_until_ready(logits)
    assert logits.shape == (BATCH, NUM_CLASSES)
    assert bool(jnp.all(jnp.isfinite(logits)))
    print("KERNEL_OK")
</pallas_src>

<mosaic_0001>
module attributes {stable_mosaic.version = 11 : i64} {
  func.func @fused_vit_kernel(%arg0: i32, %arg1: memref<8x768xf32, #tpu.memory_space<vmem>>, %arg2: memref<768x128xbf16, #tpu.memory_space<vmem>>, %arg3: memref<1x128xf32, #tpu.memory_space<vmem>>, %arg4: memref<8x128xf32, #tpu.memory_space<vmem>>, %arg5: memref<1x4x128xf32, #tpu.memory_space<vmem>>, %arg6: memref<1x128x384xbf16, #tpu.memory_space<vmem>>, %arg7: memref<1x1x384xf32, #tpu.memory_space<vmem>>, %arg8: memref<1x128x128xbf16, #tpu.memory_space<vmem>>, %arg9: memref<1x1x128xf32, #tpu.memory_space<vmem>>, %arg10: memref<1x128x256xbf16, #tpu.memory_space<vmem>>, %arg11: memref<1x1x256xf32, #tpu.memory_space<vmem>>, %arg12: memref<1x256x128xbf16, #tpu.memory_space<vmem>>, %arg13: memref<1x1x128xf32, #tpu.memory_space<vmem>>, %arg14: memref<2x128xf32, #tpu.memory_space<vmem>>, %arg15: memref<128x128xbf16, #tpu.memory_space<vmem>>, %arg16: memref<1x128xf32, #tpu.memory_space<vmem>>, %arg17: memref<8x128xf32, #tpu.memory_space<vmem>>, %arg18: memref<16x128xf32, #tpu.memory_space<vmem>>) attributes {dimension_semantics = [#tpu.dimension_semantics<arbitrary>], iteration_bounds = array<i64: 2>, scalar_prefetch = 0 : i64, scratch_operands = 1 : i64, tpu.core_type = #tpu.core_type<tc>, window_params = [{pipeline_mode = #tpu.pipeline_mode<synchronous>, transform_indices = @transform_0, window_bounds = array<i64: 8, 768>}, {pipeline_mode = #tpu.pipeline_mode<synchronous>, transform_indices = @transform_1, window_bounds = array<i64: 768, 128>}, {pipeline_mode = #tpu.pipeline_mode<synchronous>, transform_indices = @transform_2, window_bounds = array<i64: 1, 128>}, {pipeline_mode = #tpu.pipeline_mode<synchronous>, transform_indices = @transform_3, window_bounds = array<i64: 8, 128>}, {transform_indices = @transform_4, window_bounds = array<i64: 1, 4, 128>}, {transform_indices = @transform_5, window_bounds = array<i64: 1, 128, 384>}, {transform_indices = @transform_6, window_bounds = array<i64: 1, 1, 384>}, {transform_indices = @transform_7, window_bounds = array<i64: 1, 128, 128>}, {transform_indices = @transform_8, window_bounds = array<i64: 1, 1, 128>}, {transform_indices = @transform_9, window_bounds = array<i64: 1, 128, 256>}, {transform_indices = @transform_10, window_bounds = array<i64: 1, 1, 256>}, {transform_indices = @transform_11, window_bounds = array<i64: 1, 256, 128>}, {transform_indices = @transform_12, window_bounds = array<i64: 1, 1, 128>}, {pipeline_mode = #tpu.pipeline_mode<synchronous>, transform_indices = @transform_13, window_bounds = array<i64: 2, 128>}, {pipeline_mode = #tpu.pipeline_mode<synchronous>, transform_indices = @transform_14, window_bounds = array<i64: 128, 128>}, {pipeline_mode = #tpu.pipeline_mode<synchronous>, transform_indices = @transform_15, window_bounds = array<i64: 1, 128>}, {pipeline_mode = #tpu.pipeline_mode<synchronous>, transform_indices = @transform_16, window_bounds = array<i64: 8, 128>}]} {
    %c0_i32 = arith.constant 0 : i32
    %0 = arith.cmpi eq, %arg0, %c0_i32 : i32
    %1 = arith.extui %0 : i1 to i32
    %c0_i32_0 = arith.constant 0 : i32
    %2 = arith.cmpi ne, %1, %c0_i32_0 : i32
    scf.if %2 {
      %c0_96 = arith.constant 0 : index
      %c0_97 = arith.constant 0 : index
      %306 = vector.load %arg1[%c0_96, %c0_97] : memref<8x768xf32, #tpu.memory_space<vmem>>, vector<8x768xf32>
      %c0_98 = arith.constant 0 : index
      %c0_99 = arith.constant 0 : index
      %307 = vector.load %arg2[%c0_98, %c0_99] : memref<768x128xbf16, #tpu.memory_space<vmem>>, vector<768x128xbf16>
      %c0_100 = arith.constant 0 : index
      %c0_101 = arith.constant 0 : index
      %308 = vector.load %arg3[%c0_100, %c0_101] : memref<1x128xf32, #tpu.memory_space<vmem>>, vector<1x128xf32>
      %309 = arith.truncf %306 : vector<8x768xf32> to vector<8x768xbf16>
      %cst_102 = arith.constant dense<0.000000e+00> : vector<8x128xf32>
      %310 = tpu.matmul %309, %307, %cst_102 {dimension_numbers = #tpu.dot_dimension_numbers<[1], [0], [0], [1], [0, 0, 1, 1], [], []>} : vector<8x768xbf16>, vector<768x128xbf16>, vector<8x128xf32> -> vector<8x128xf32>
      %311 = vector.broadcast %308 : vector<1x128xf32> to vector<8x128xf32>
      %312 = arith.addf %310, %311 : vector<8x128xf32>
      %c0_103 = arith.constant 0 : index
      %c0_104 = arith.constant 0 : index
      %313 = vector.load %arg4[%c0_103, %c0_104] : memref<8x128xf32, #tpu.memory_space<vmem>>, vector<8x128xf32>
      %cst_105 = arith.constant 0.000000e+00 : f32
      %314 = vector.broadcast %cst_105 : f32 to vector<1x128xf32>
      %cst_106 = arith.constant 0.000000e+00 : f32
      %315 = vector.broadcast %cst_106 : f32 to vector<3x128xf32>
      %316 = vector.extract_strided_slice %312 {offsets = [0, 0], sizes = [4, 128], strides = [1, 1]} : vector<8x128xf32> to vector<4x128xf32>
      %317 = tpu.concatenate %314, %316, %315 in 0 : vector<1x128xf32>, vector<4x128xf32>, vector<3x128xf32> -> vector<8x128xf32>
      %318 = arith.addf %313, %317 : vector<8x128xf32>
      %319 = vector.extract_strided_slice %312 {offsets = [4, 0], sizes = [4, 128], strides = [1, 1]} : vector<8x128xf32> to vector<4x128xf32>
      %320 = tpu.concatenate %314, %319, %315 in 0 : vector<1x128xf32>, vector<4x128xf32>, vector<3x128xf32> -> vector<8x128xf32>
      %321 = arith.addf %313, %320 : vector<8x128xf32>
      %322 = tpu.concatenate %318, %321 in 0 : vector<8x128xf32>, vector<8x128xf32> -> vector<16x128xf32>
      %c0_107 = arith.constant 0 : index
      %c0_108 = arith.constant 0 : index
      %323 = vector.load %arg18[%c0_107, %c0_108] : memref<16x128xf32, #tpu.memory_space<vmem>>, vector<16x128xf32>
      tpu.vector_store %arg18[%c0_107, %c0_108], %322 {strides = array<i32>} : memref<16x128xf32, #tpu.memory_space<vmem>>, vector<16x128xf32>,
    } else {
    }
    %c0 = arith.constant 0 : index
    %c0_1 = arith.constant 0 : index
    %3 = vector.load %arg18[%c0, %c0_1] : memref<16x128xf32, #tpu.memory_space<vmem>>, vector<16x128xf32>
    %c0_2 = arith.constant 0 : index
    %c0_3 = arith.constant 0 : index
    %c0_4 = arith.constant 0 : index
    %4 = vector.load %arg5[%c0_2, %c0_3, %c0_4] : memref<1x4x128xf32, #tpu.memory_space<vmem>>, vector<1x4x128xf32>
    %5 = vector.shape_cast %4 : vector<1x4x128xf32> to vector<4x128xf32>
    %6 = vector.extract_strided_slice %5 {offsets = [0, 0], sizes = [1, 128], strides = [1, 1]} : vector<4x128xf32> to vector<1x128xf32>
    %7 = vector.extract_strided_slice %5 {offsets = [1, 0], sizes = [1, 128], strides = [1, 1]} : vector<4x128xf32> to vector<1x128xf32>
    %8 = vector.extract_strided_slice %5 {offsets = [2, 0], sizes = [1, 128], strides = [1, 1]} : vector<4x128xf32> to vector<1x128xf32>
    %9 = vector.extract_strided_slice %5 {offsets = [3, 0], sizes = [1, 128], strides = [1, 1]} : vector<4x128xf32> to vector<1x128xf32>
    %cst = arith.constant dense<0.000000e+00> : vector<16xf32>
    %10 = vector.multi_reduction <add>, %3, %cst [1] : vector<16x128xf32> to vector<16xf32>
    %11 = vector.shape_cast %10 : vector<16xf32> to vector<16x1xf32>
    %cst_5 = arith.constant 1.280000e+02 : f32
    %12 = vector.broadcast %cst_5 : f32 to vector<16x1xf32>
    %13 = arith.divf %11, %12 : vector<16x1xf32>
    %14 = vector.broadcast %13 : vector<16x1xf32> to vector<16x128xf32>
    %15 = arith.subf %3, %14 : vector<16x128xf32>
    %16 = arith.mulf %15, %15 : vector<16x128xf32>
    %cst_6 = arith.constant dense<0.000000e+00> : vector<16xf32>
    %17 = vector.multi_reduction <add>, %16, %cst_6 [1] : vector<16x128xf32> to vector<16xf32>
    %18 = vector.shape_cast %17 : vector<16xf32> to vector<16x1xf32>
    %cst_7 = arith.constant 1.280000e+02 : f32
    %19 = vector.broadcast %cst_7 : f32 to vector<16x1xf32>
    %20 = arith.divf %18, %19 : vector<16x1xf32>
    %21 = vector.broadcast %13 : vector<16x1xf32> to vector<16x128xf32>
    %22 = arith.subf %3, %21 : vector<16x128xf32>
    %cst_8 = arith.constant 9.99999997E-7 : f32
    %23 = vector.broadcast %cst_8 : f32 to vector<16x1xf32>
    %24 = arith.addf %20, %23 : vector<16x1xf32>
    %25 = math.rsqrt %24 : vector<16x1xf32>
    %26 = vector.broadcast %25 : vector<16x1xf32> to vector<16x128xf32>
    %27 = arith.mulf %22, %26 : vector<16x128xf32>
    %28 = vector.broadcast %6 : vector<1x128xf32> to vector<16x128xf32>
    %29 = arith.mulf %27, %28 : vector<16x128xf32>
    %30 = vector.broadcast %7 : vector<1x128xf32> to vector<16x128xf32>
    %31 = arith.addf %29, %30 : vector<16x128xf32>
    %c0_9 = arith.constant 0 : index
    %c0_10 = arith.constant 0 : index
    %c0_11 = arith.constant 0 : index
    %32 = vector.load %arg6[%c0_9, %c0_10, %c0_11] : memref<1x128x384xbf16, #tpu.memory_space<vmem>>, vector<1x128x384xbf16>
    %33 = vector.shape_cast %32 : vector<1x128x384xbf16> to vector<128x384xbf16>
    %c0_12 = arith.constant 0 : index
    %c0_13 = arith.constant 0 : index
    %c0_14 = arith.constant 0 : index
    %34 = vector.load %arg7[%c0_12, %c0_13, %c0_14] : memref<1x1x384xf32, #tpu.memory_space<vmem>>, vector<1x1x384xf32>
    %35 = vector.shape_cast %34 : vector<1x1x384xf32> to vector<1x384xf32>
    %36 = arith.truncf %31 : vector<16x128xf32> to vector<16x128xbf16>
    %cst_15 = arith.constant dense<0.000000e+00> : vector<16x384xf32>
    %37 = tpu.matmul %36, %33, %cst_15 {dimension_numbers = #tpu.dot_dimension_numbers<[1], [0], [0], [1], [0, 0, 1, 1], [], []>} : vector<16x128xbf16>, vector<128x384xbf16>, vector<16x384xf32> -> vector<16x384xf32>
    %38 = vector.broadcast %35 : vector<1x384xf32> to vector<16x384xf32>
    %39 = arith.addf %37, %38 : vector<16x384xf32>
    %40 = tpu.iota {dimensions = array<i32: 1>} : vector<1x8xi32>
    %c5_i32 = arith.constant 5 : i32
    %41 = vector.broadcast %c5_i32 : i32 to vector<1x8xi32>
    %42 = arith.cmpi slt, %40, %41 : vector<1x8xi32>
    %43 = vector.extract_strided_slice %39 {offsets = [0, 0], sizes = [8, 32], strides = [1, 1]} : vector<16x384xf32> to vector<8x32xf32>
    %44 = vector.extract_strided_slice %39 {offsets = [0, 128], sizes = [8, 32], strides = [1, 1]} : vector<16x384xf32> to vector<8x32xf32>
    %45 = vector.extract_strided_slice %39 {offsets = [0, 256], sizes = [8, 32], strides = [1, 1]} : vector<16x384xf32> to vector<8x32xf32>
    %46 = arith.truncf %43 : vector<8x32xf32> to vector<8x32xbf16>
    %47 = arith.truncf %44 : vector<8x32xf32> to vector<8x32xbf16>
    %cst_16 = arith.constant dense<0.000000e+00> : vector<8x8xf32>
    %48 = tpu.matmul %46, %47, %cst_16 {dimension_numbers = #tpu.dot_dimension_numbers<[1], [1], [0], [0], [0, 0, 1, 0], [], []>} : vector<8x32xbf16>, vector<8x32xbf16>, vector<8x8xf32> -> vector<8x8xf32>
    %cst_17 = arith.constant 0.176776692 : f32
    %49 = vector.broadcast %cst_17 : f32 to vector<8x8xf32>
    %50 = arith.mulf %48, %49 : vector<8x8xf32>
    %cst_18 = arith.constant -1.000000e+30 : f32
    %51 = vector.shape_cast %42 : vector<1x8xi1> to vector<1x8xi1>
    %52 = vector.broadcast %51 : vector<1x8xi1> to vector<8x8xi1>
    %53 = vector.broadcast %cst_18 : f32 to vector<8x8xf32>
    %54 = arith.select %52, %50, %53 : vector<8x8xi1>, vector<8x8xf32>
    %cst_19 = arith.constant dense<0xFF800000> : vector<8xf32>
    %55 = vector.multi_reduction <maximumf>, %54, %cst_19 [1] : vector<8x8xf32> to vector<8xf32>
    %56 = vector.shape_cast %55 : vector<8xf32> to vector<8x1xf32>
    %57 = vector.broadcast %56 : vector<8x1xf32> to vector<8x8xf32>
    %58 = arith.subf %54, %57 : vector<8x8xf32>
    %59 = math.exp %58 : vector<8x8xf32>
    %cst_20 = arith.constant dense<0.000000e+00> : vector<8xf32>
    %60 = vector.multi_reduction <add>, %59, %cst_20 [1] : vector<8x8xf32> to vector<8xf32>
    %61 = vector.shape_cast %60 : vector<8xf32> to vector<8x1xf32>
    %62 = tpu.reciprocal %61 {approx = true} : vector<8x1xf32> -> vector<8x1xf32>
    %63 = vector.broadcast %62 : vector<8x1xf32> to vector<8x8xf32>
    %64 = arith.mulf %59, %63 : vector<8x8xf32>
    %65 = arith.truncf %64 : vector<8x8xf32> to vector<8x8xbf16>
    %66 = arith.truncf %45 : vector<8x32xf32> to vector<8x32xbf16>
    %cst_21 = arith.constant dense<0.000000e+00> : vector<8x32xf32>
    %67 = tpu.matmul %65, %66, %cst_21 {dimension_numbers = #tpu.dot_dimension_numbers<[1], [0], [0], [1], [0, 0, 1, 1], [], []>} : vector<8x8xbf16>, vector<8x32xbf16>, vector<8x32xf32> -> vector<8x32xf32>
    %68 = vector.extract_strided_slice %39 {offsets = [0, 32], sizes = [8, 32], strides = [1, 1]} : vector<16x384xf32> to vector<8x32xf32>
    %69 = vector.extract_strided_slice %39 {offsets = [0, 160], sizes = [8, 32], strides = [1, 1]} : vector<16x384xf32> to vector<8x32xf32>
    %70 = vector.extract_strided_slice %39 {offsets = [0, 288], sizes = [8, 32], strides = [1, 1]} : vector<16x384xf32> to vector<8x32xf32>
    %71 = arith.truncf %68 : vector<8x32xf32> to vector<8x32xbf16>
    %72 = arith.truncf %69 : vector<8x32xf32> to vector<8x32xbf16>
    %cst_22 = arith.constant dense<0.000000e+00> : vector<8x8xf32>
    %73 = tpu.matmul %71, %72, %cst_22 {dimension_numbers = #tpu.dot_dimension_numbers<[1], [1], [0], [0], [0, 0, 1, 0], [], []>} : vector<8x32xbf16>, vector<8x32xbf16>, vector<8x8xf32> -> vector<8x8xf32>
    %cst_23 = arith.constant 0.176776692 : f32
    %74 = vector.broadcast %cst_23 : f32 to vector<8x8xf32>
    %75 = arith.mulf %73, %74 : vector<8x8xf32>
    %cst_24 = arith.constant -1.000000e+30 : f32
    %76 = vector.shape_cast %42 : vector<1x8xi1> to vector<1x8xi1>
    %77 = vector.broadcast %76 : vector<1x8xi1> to vector<8x8xi1>
    %78 = vector.broadcast %cst_24 : f32 to vector<8x8xf32>
    %79 = arith.select %77, %75, %78 : vector<8x8xi1>, vector<8x8xf32>
    %cst_25 = arith.constant dense<0xFF800000> : vector<8xf32>
    %80 = vector.multi_reduction <maximumf>, %79, %cst_25 [1] : vector<8x8xf32> to vector<8xf32>
    %81 = vector.shape_cast %80 : vector<8xf32> to vector<8x1xf32>
    %82 = vector.broadcast %81 : vector<8x1xf32> to vector<8x8xf32>
    %83 = arith.subf %79, %82 : vector<8x8xf32>
    %84 = math.exp %83 : vector<8x8xf32>
    %cst_26 = arith.constant dense<0.000000e+00> : vector<8xf32>
    %85 = vector.multi_reduction <add>, %84, %cst_26 [1] : vector<8x8xf32> to vector<8xf32>
    %86 = vector.shape_cast %85 : vector<8xf32> to vector<8x1xf32>
    %87 = tpu.reciprocal %86 {approx = true} : vector<8x1xf32> -> vector<8x1xf32>
    %88 = vector.broadcast %87 : vector<8x1xf32> to vector<8x8xf32>
    %89 = arith.mulf %84, %88 : vector<8x8xf32>
    %90 = arith.truncf %89 : vector<8x8xf32> to vector<8x8xbf16>
    %91 = arith.truncf %70 : vector<8x32xf32> to vector<8x32xbf16>
    %cst_27 = arith.constant dense<0.000000e+00> : vector<8x32xf32>
    %92 = tpu.matmul %90, %91, %cst_27 {dimension_numbers = #tpu.dot_dimension_numbers<[1], [0], [0], [1], [0, 0, 1, 1], [], []>} : vector<8x8xbf16>, vector<8x32xbf16>, vector<8x32xf32> -> vector<8x32xf32>
    %93 = vector.extract_strided_slice %39 {offsets = [0, 64], sizes = [8, 32], strides = [1, 1]} : vector<16x384xf32> to vector<8x32xf32>
    %94 = vector.extract_strided_slice %39 {offsets = [0, 192], sizes = [8, 32], strides = [1, 1]} : vector<16x384xf32> to vector<8x32xf32>
    %95 = vector.extract_strided_slice %39 {offsets = [0, 320], sizes = [8, 32], strides = [1, 1]} : vector<16x384xf32> to vector<8x32xf32>
    %96 = arith.truncf %93 : vector<8x32xf32> to vector<8x32xbf16>
    %97 = arith.truncf %94 : vector<8x32xf32> to vector<8x32xbf16>
    %cst_28 = arith.constant dense<0.000000e+00> : vector<8x8xf32>
    %98 = tpu.matmul %96, %97, %cst_28 {dimension_numbers = #tpu.dot_dimension_numbers<[1], [1], [0], [0], [0, 0, 1, 0], [], []>} : vector<8x32xbf16>, vector<8x32xbf16>, vector<8x8xf32> -> vector<8x8xf32>
    %cst_29 = arith.constant 0.176776692 : f32
    %99 = vector.broadcast %cst_29 : f32 to vector<8x8xf32>
    %100 = arith.mulf %98, %99 : vector<8x8xf32>
    %cst_30 = arith.constant -1.000000e+30 : f32
    %101 = vector.shape_cast %42 : vector<1x8xi1> to vector<1x8xi1>
    %102 = vector.broadcast %101 : vector<1x8xi1> to vector<8x8xi1>
    %103 = vector.broadcast %cst_30 : f32 to vector<8x8xf32>
    %104 = arith.select %102, %100, %103 : vector<8x8xi1>, vector<8x8xf32>
    %cst_31 = arith.constant dense<0xFF800000> : vector<8xf32>
    %105 = vector.multi_reduction <maximumf>, %104, %cst_31 [1] : vector<8x8xf32> to vector<8xf32>
    %106 = vector.shape_cast %105 : vector<8xf32> to vector<8x1xf32>
    %107 = vector.broadcast %106 : vector<8x1xf32> to vector<8x8xf32>
    %108 = arith.subf %104, %107 : vector<8x8xf32>
    %109 = math.exp %108 : vector<8x8xf32>
    %cst_32 = arith.constant dense<0.000000e+00> : vector<8xf32>
    %110 = vector.multi_reduction <add>, %109, %cst_32 [1] : vector<8x8xf32> to vector<8xf32>
    %111 = vector.shape_cast %110 : vector<8xf32> to vector<8x1xf32>
    %112 = tpu.reciprocal %111 {approx = true} : vector<8x1xf32> -> vector<8x1xf32>
    %113 = vector.broadcast %112 : vector<8x1xf32> to vector<8x8xf32>
    %114 = arith.mulf %109, %113 : vector<8x8xf32>
    %115 = arith.truncf %114 : vector<8x8xf32> to vector<8x8xbf16>
    %116 = arith.truncf %95 : vector<8x32xf32> to vector<8x32xbf16>
    %cst_33 = arith.constant dense<0.000000e+00> : vector<8x32xf32>
    %117 = tpu.matmul %115, %116, %cst_33 {dimension_numbers = #tpu.dot_dimension_numbers<[1], [0], [0], [1], [0, 0, 1, 1], [], []>} : vector<8x8xbf16>, vector<8x32xbf16>, vector<8x32xf32> -> vector<8x32xf32>
    %118 = vector.extract_strided_slice %39 {offsets = [0, 96], sizes = [8, 32], strides = [1, 1]} : vector<16x384xf32> to vector<8x32xf32>
    %119 = vector.extract_strided_slice %39 {offsets = [0, 224], sizes = [8, 32], strides = [1, 1]} : vector<16x384xf32> to vector<8x32xf32>
    %120 = vector.extract_strided_slice %39 {offsets = [0, 352], sizes = [8, 32], strides = [1, 1]} : vector<16x384xf32> to vector<8x32xf32>
    %121 = arith.truncf %118 : vector<8x32xf32> to vector<8x32xbf16>
    %122 = arith.truncf %119 : vector<8x32xf32> to vector<8x32xbf16>
    %cst_34 = arith.constant dense<0.000000e+00> : vector<8x8xf32>
    %123 = tpu.matmul %121, %122, %cst_34 {dimension_numbers = #tpu.dot_dimension_numbers<[1], [1], [0], [0], [0, 0, 1, 0], [], []>} : vector<8x32xbf16>, vector<8x32xbf16>, vector<8x8xf32> -> vector<8x8xf32>
    %cst_35 = arith.constant 0.176776692 : f32
    %124 = vector.broadcast %cst_35 : f32 to vector<8x8xf32>
    %125 = arith.mulf %123, %124 : vector<8x8xf32>
    %cst_36 = arith.constant -1.000000e+30 : f32
    %126 = vector.shape_cast %42 : vector<1x8xi1> to vector<1x8xi1>
    %127 = vector.broadcast %126 : vector<1x8xi1> to vector<8x8xi1>
    %128 = vector.broadcast %cst_36 : f32 to vector<8x8xf32>
    %129 = arith.select %127, %125, %128 : vector<8x8xi1>, vector<8x8xf32>
    %cst_37 = arith.constant dense<0xFF800000> : vector<8xf32>
    %130 = vector.multi_reduction <maximumf>, %129, %cst_37 [1] : vector<8x8xf32> to vector<8xf32>
    %131 = vector.shape_cast %130 : vector<8xf32> to vector<8x1xf32>
    %132 = vector.broadcast %131 : vector<8x1xf32> to vector<8x8xf32>
    %133 = arith.subf %129, %132 : vector<8x8xf32>
    %134 = math.exp %133 : vector<8x8xf32>
    %cst_38 = arith.constant dense<0.000000e+00> : vector<8xf32>
    %135 = vector.multi_reduction <add>, %134, %cst_38 [1] : vector<8x8xf32> to vector<8xf32>
    %136 = vector.shape_cast %135 : vector<8xf32> to vector<8x1xf32>
    %137 = tpu.reciprocal %136 {approx = true} : vector<8x1xf32> -> vector<8x1xf32>
    %138 = vector.broadcast %137 : vector<8x1xf32> to vector<8x8xf32>
    %139 = arith.mulf %134, %138 : vector<8x8xf32>
    %140 = arith.truncf %139 : vector<8x8xf32> to vector<8x8xbf16>
    %141 = arith.truncf %120 : vector<8x32xf32> to vector<8x32xbf16>
    %cst_39 = arith.constant dense<0.000000e+00> : vector<8x32xf32>
    %142 = tpu.matmul %140, %141, %cst_39 {dimension_numbers = #tpu.dot_dimension_numbers<[1], [0], [0], [1], [0, 0, 1, 1], [], []>} : vector<8x8xbf16>, vector<8x32xbf16>, vector<8x32xf32> -> vector<8x32xf32>
    %143 = tpu.concatenate %67, %92, %117, %142 in 1 : vector<8x32xf32>, vector<8x32xf32>, vector<8x32xf32>, vector<8x32xf32> -> vector<8x128xf32>
    %144 = vector.extract_strided_slice %39 {offsets = [8, 0], sizes = [8, 32], strides = [1, 1]} : vector<16x384xf32> to vector<8x32xf32>
    %145 = vector.extract_strided_slice %39 {offsets = [8, 128], sizes = [8, 32], strides = [1, 1]} : vector<16x384xf32> to vector<8x32xf32>
    %146 = vector.extract_strided_slice %39 {offsets = [8, 256], sizes = [8, 32], strides = [1, 1]} : vector<16x384xf32> to vector<8x32xf32>
    %147 = arith.truncf %144 : vector<8x32xf32> to vector<8x32xbf16>
    %148 = arith.truncf %145 : vector<8x32xf32> to vector<8x32xbf16>
    %cst_40 = arith.constant dense<0.000000e+00> : vector<8x8xf32>
    %149 = tpu.matmul %147, %148, %cst_40 {dimension_numbers = #tpu.dot_dimension_numbers<[1], [1], [0], [0], [0, 0, 1, 0], [], []>} : vector<8x32xbf16>, vector<8x32xbf16>, vector<8x8xf32> -> vector<8x8xf32>
    %cst_41 = arith.constant 0.176776692 : f32
    %150 = vector.broadcast %cst_41 : f32 to vector<8x8xf32>
    %151 = arith.mulf %149, %150 : vector<8x8xf32>
    %cst_42 = arith.constant -1.000000e+30 : f32
    %152 = vector.shape_cast %42 : vector<1x8xi1> to vector<1x8xi1>
    %153 = vector.broadcast %152 : vector<1x8xi1> to vector<8x8xi1>
    %154 = vector.broadcast %cst_42 : f32 to vector<8x8xf32>
    %155 = arith.select %153, %151, %154 : vector<8x8xi1>, vector<8x8xf32>
    %cst_43 = arith.constant dense<0xFF800000> : vector<8xf32>
    %156 = vector.multi_reduction <maximumf>, %155, %cst_43 [1] : vector<8x8xf32> to vector<8xf32>
    %157 = vector.shape_cast %156 : vector<8xf32> to vector<8x1xf32>
    %158 = vector.broadcast %157 : vector<8x1xf32> to vector<8x8xf32>
    %159 = arith.subf %155, %158 : vector<8x8xf32>
    %160 = math.exp %159 : vector<8x8xf32>
    %cst_44 = arith.constant dense<0.000000e+00> : vector<8xf32>
    %161 = vector.multi_reduction <add>, %160, %cst_44 [1] : vector<8x8xf32> to vector<8xf32>
    %162 = vector.shape_cast %161 : vector<8xf32> to vector<8x1xf32>
    %163 = tpu.reciprocal %162 {approx = true} : vector<8x1xf32> -> vector<8x1xf32>
    %164 = vector.broadcast %163 : vector<8x1xf32> to vector<8x8xf32>
    %165 = arith.mulf %160, %164 : vector<8x8xf32>
    %166 = arith.truncf %165 : vector<8x8xf32> to vector<8x8xbf16>
    %167 = arith.truncf %146 : vector<8x32xf32> to vector<8x32xbf16>
    %cst_45 = arith.constant dense<0.000000e+00> : vector<8x32xf32>
    %168 = tpu.matmul %166, %167, %cst_45 {dimension_numbers = #tpu.dot_dimension_numbers<[1], [0], [0], [1], [0, 0, 1, 1], [], []>} : vector<8x8xbf16>, vector<8x32xbf16>, vector<8x32xf32> -> vector<8x32xf32>
    %169 = vector.extract_strided_slice %39 {offsets = [8, 32], sizes = [8, 32], strides = [1, 1]} : vector<16x384xf32> to vector<8x32xf32>
    %170 = vector.extract_strided_slice %39 {offsets = [8, 160], sizes = [8, 32], strides = [1, 1]} : vector<16x384xf32> to vector<8x32xf32>
    %171 = vector.extract_strided_slice %39 {offsets = [8, 288], sizes = [8, 32], strides = [1, 1]} : vector<16x384xf32> to vector<8x32xf32>
    %172 = arith.truncf %169 : vector<8x32xf32> to vector<8x32xbf16>
    %173 = arith.truncf %170 : vector<8x32xf32> to vector<8x32xbf16>
    %cst_46 = arith.constant dense<0.000000e+00> : vector<8x8xf32>
    %174 = tpu.matmul %172, %173, %cst_46 {dimension_numbers = #tpu.dot_dimension_numbers<[1], [1], [0], [0], [0, 0, 1, 0], [], []>} : vector<8x32xbf16>, vector<8x32xbf16>, vector<8x8xf32> -> vector<8x8xf32>
    %cst_47 = arith.constant 0.176776692 : f32
    %175 = vector.broadcast %cst_47 : f32 to vector<8x8xf32>
    %176 = arith.mulf %174, %175 : vector<8x8xf32>
    %cst_48 = arith.constant -1.000000e+30 : f32
    %177 = vector.shape_cast %42 : vector<1x8xi1> to vector<1x8xi1>
    %178 = vector.broadcast %177 : vector<1x8xi1> to vector<8x8xi1>
    %179 = vector.broadcast %cst_48 : f32 to vector<8x8xf32>
    %180 = arith.select %178, %176, %179 : vector<8x8xi1>, vector<8x8xf32>
    %cst_49 = arith.constant dense<0xFF800000> : vector<8xf32>
    %181 = vector.multi_reduction <maximumf>, %180, %cst_49 [1] : vector<8x8xf32> to vector<8xf32>
    %182 = vector.shape_cast %181 : vector<8xf32> to vector<8x1xf32>
    %183 = vector.broadcast %182 : vector<8x1xf32> to vector<8x8xf32>
    %184 = arith.subf %180, %183 : vector<8x8xf32>
    %185 = math.exp %184 : vector<8x8xf32>
    %cst_50 = arith.constant dense<0.000000e+00> : vector<8xf32>
    %186 = vector.multi_reduction <add>, %185, %cst_50 [1] : vector<8x8xf32> to vector<8xf32>
    %187 = vector.shape_cast %186 : vector<8xf32> to vector<8x1xf32>
    %188 = tpu.reciprocal %187 {approx = true} : vector<8x1xf32> -> vector<8x1xf32>
    %189 = vector.broadcast %188 : vector<8x1xf32> to vector<8x8xf32>
    %190 = arith.mulf %185, %189 : vector<8x8xf32>
    %191 = arith.truncf %190 : vector<8x8xf32> to vector<8x8xbf16>
    %192 = arith.truncf %171 : vector<8x32xf32> to vector<8x32xbf16>
    %cst_51 = arith.constant dense<0.000000e+00> : vector<8x32xf32>
    %193 = tpu.matmul %191, %192, %cst_51 {dimension_numbers = #tpu.dot_dimension_numbers<[1], [0], [0], [1], [0, 0, 1, 1], [], []>} : vector<8x8xbf16>, vector<8x32xbf16>, vector<8x32xf32> -> vector<8x32xf32>
    %194 = vector.extract_strided_slice %39 {offsets = [8, 64], sizes = [8, 32], strides = [1, 1]} : vector<16x384xf32> to vector<8x32xf32>
    %195 = vector.extract_strided_slice %39 {offsets = [8, 192], sizes = [8, 32], strides = [1, 1]} : vector<16x384xf32> to vector<8x32xf32>
    %196 = vector.extract_strided_slice %39 {offsets = [8, 320], sizes = [8, 32], strides = [1, 1]} : vector<16x384xf32> to vector<8x32xf32>
    %197 = arith.truncf %194 : vector<8x32xf32> to vector<8x32xbf16>
    %198 = arith.truncf %195 : vector<8x32xf32> to vector<8x32xbf16>
    %cst_52 = arith.constant dense<0.000000e+00> : vector<8x8xf32>
    %199 = tpu.matmul %197, %198, %cst_52 {dimension_numbers = #tpu.dot_dimension_numbers<[1], [1], [0], [0], [0, 0, 1, 0], [], []>} : vector<8x32xbf16>, vector<8x32xbf16>, vector<8x8xf32> -> vector<8x8xf32>
    %cst_53 = arith.constant 0.176776692 : f32
    %200 = vector.broadcast %cst_53 : f32 to vector<8x8xf32>
    %201 = arith.mulf %199, %200 : vector<8x8xf32>
    %cst_54 = arith.constant -1.000000e+30 : f32
    %202 = vector.shape_cast %42 : vector<1x8xi1> to vector<1x8xi1>
    %203 = vector.broadcast %202 : vector<1x8xi1> to vector<8x8xi1>
    %204 = vector.broadcast %cst_54 : f32 to vector<8x8xf32>
    %205 = arith.select %203, %201, %204 : vector<8x8xi1>, vector<8x8xf32>
    %cst_55 = arith.constant dense<0xFF800000> : vector<8xf32>
    %206 = vector.multi_reduction <maximumf>, %205, %cst_55 [1] : vector<8x8xf32> to vector<8xf32>
    %207 = vector.shape_cast %206 : vector<8xf32> to vector<8x1xf32>
    %208 = vector.broadcast %207 : vector<8x1xf32> to vector<8x8xf32>
    %209 = arith.subf %205, %208 : vector<8x8xf32>
    %210 = math.exp %209 : vector<8x8xf32>
    %cst_56 = arith.constant dense<0.000000e+00> : vector<8xf32>
    %211 = vector.multi_reduction <add>, %210, %cst_56 [1] : vector<8x8xf32> to vector<8xf32>
    %212 = vector.shape_cast %211 : vector<8xf32> to vector<8x1xf32>
    %213 = tpu.reciprocal %212 {approx = true} : vector<8x1xf32> -> vector<8x1xf32>
    %214 = vector.broadcast %213 : vector<8x1xf32> to vector<8x8xf32>
    %215 = arith.mulf %210, %214 : vector<8x8xf32>
    %216 = arith.truncf %215 : vector<8x8xf32> to vector<8x8xbf16>
    %217 = arith.truncf %196 : vector<8x32xf32> to vector<8x32xbf16>
    %cst_57 = arith.constant dense<0.000000e+00> : vector<8x32xf32>
    %218 = tpu.matmul %216, %217, %cst_57 {dimension_numbers = #tpu.dot_dimension_numbers<[1], [0], [0], [1], [0, 0, 1, 1], [], []>} : vector<8x8xbf16>, vector<8x32xbf16>, vector<8x32xf32> -> vector<8x32xf32>
    %219 = vector.extract_strided_slice %39 {offsets = [8, 96], sizes = [8, 32], strides = [1, 1]} : vector<16x384xf32> to vector<8x32xf32>
    %220 = vector.extract_strided_slice %39 {offsets = [8, 224], sizes = [8, 32], strides = [1, 1]} : vector<16x384xf32> to vector<8x32xf32>
    %221 = vector.extract_strided_slice %39 {offsets = [8, 352], sizes = [8, 32], strides = [1, 1]} : vector<16x384xf32> to vector<8x32xf32>
    %222 = arith.truncf %219 : vector<8x32xf32> to vector<8x32xbf16>
    %223 = arith.truncf %220 : vector<8x32xf32> to vector<8x32xbf16>
    %cst_58 = arith.constant dense<0.000000e+00> : vector<8x8xf32>
    %224 = tpu.matmul %222, %223, %cst_58 {dimension_numbers = #tpu.dot_dimension_numbers<[1], [1], [0], [0], [0, 0, 1, 0], [], []>} : vector<8x32xbf16>, vector<8x32xbf16>, vector<8x8xf32> -> vector<8x8xf32>
    %cst_59 = arith.constant 0.176776692 : f32
    %225 = vector.broadcast %cst_59 : f32 to vector<8x8xf32>
    %226 = arith.mulf %224, %225 : vector<8x8xf32>
    %cst_60 = arith.constant -1.000000e+30 : f32
    %227 = vector.shape_cast %42 : vector<1x8xi1> to vector<1x8xi1>
    %228 = vector.broadcast %227 : vector<1x8xi1> to vector<8x8xi1>
    %229 = vector.broadcast %cst_60 : f32 to vector<8x8xf32>
    %230 = arith.select %228, %226, %229 : vector<8x8xi1>, vector<8x8xf32>
    %cst_61 = arith.constant dense<0xFF800000> : vector<8xf32>
    %231 = vector.multi_reduction <maximumf>, %230, %cst_61 [1] : vector<8x8xf32> to vector<8xf32>
    %232 = vector.shape_cast %231 : vector<8xf32> to vector<8x1xf32>
    %233 = vector.broadcast %232 : vector<8x1xf32> to vector<8x8xf32>
    %234 = arith.subf %230, %233 : vector<8x8xf32>
    %235 = math.exp %234 : vector<8x8xf32>
    %cst_62 = arith.constant dense<0.000000e+00> : vector<8xf32>
    %236 = vector.multi_reduction <add>, %235, %cst_62 [1] : vector<8x8xf32> to vector<8xf32>
    %237 = vector.shape_cast %236 : vector<8xf32> to vector<8x1xf32>
    %238 = tpu.reciprocal %237 {approx = true} : vector<8x1xf32> -> vector<8x1xf32>
    %239 = vector.broadcast %238 : vector<8x1xf32> to vector<8x8xf32>
    %240 = arith.mulf %235, %239 : vector<8x8xf32>
    %241 = arith.truncf %240 : vector<8x8xf32> to vector<8x8xbf16>
    %242 = arith.truncf %221 : vector<8x32xf32> to vector<8x32xbf16>
    %cst_63 = arith.constant dense<0.000000e+00> : vector<8x32xf32>
    %243 = tpu.matmul %241, %242, %cst_63 {dimension_numbers = #tpu.dot_dimension_numbers<[1], [0], [0], [1], [0, 0, 1, 1], [], []>} : vector<8x8xbf16>, vector<8x32xbf16>, vector<8x32xf32> -> vector<8x32xf32>
    %244 = tpu.concatenate %168, %193, %218, %243 in 1 : vector<8x32xf32>, vector<8x32xf32>, vector<8x32xf32>, vector<8x32xf32> -> vector<8x128xf32>
    %245 = tpu.concatenate %143, %244 in 0 : vector<8x128xf32>, vector<8x128xf32> -> vector<16x128xf32>
    %c0_64 = arith.constant 0 : index
    %c0_65 = arith.constant 0 : index
    %c0_66 = arith.constant 0 : index
    %246 = vector.load %arg8[%c0_64, %c0_65, %c0_66] : memref<1x128x128xbf16, #tpu.memory_space<vmem>>, vector<1x128x128xbf16>
    %247 = vector.shape_cast %246 : vector<1x128x128xbf16> to vector<128x128xbf16>
    %c0_67 = arith.constant 0 : index
    %c0_68 = arith.constant 0 : index
    %c0_69 = arith.constant 0 : index
    %248 = vector.load %arg9[%c0_67, %c0_68, %c0_69] : memref<1x1x128xf32, #tpu.memory_space<vmem>>, vector<1x1x128xf32>
    %249 = vector.shape_cast %248 : vector<1x1x128xf32> to vector<1x128xf32>
    %250 = arith.truncf %245 : vector<16x128xf32> to vector<16x128xbf16>
    %cst_70 = arith.constant dense<0.000000e+00> : vector<16x128xf32>
    %251 = tpu.matmul %250, %247, %cst_70 {dimension_numbers = #tpu.dot_dimension_numbers<[1], [0], [0], [1], [0, 0, 1, 1], [], []>} : vector<16x128xbf16>, vector<128x128xbf16>, vector<16x128xf32> -> vector<16x128xf32>
    %252 = vector.broadcast %249 : vector<1x128xf32> to vector<16x128xf32>
    %253 = arith.addf %251, %252 : vector<16x128xf32>
    %254 = arith.addf %3, %253 : vector<16x128xf32>
    %cst_71 = arith.constant dense<0.000000e+00> : vector<16xf32>
    %255 = vector.multi_reduction <add>, %254, %cst_71 [1] : vector<16x128xf32> to vector<16xf32>
    %256 = vector.shape_cast %255 : vector<16xf32> to vector<16x1xf32>
    %cst_72 = arith.constant 1.280000e+02 : f32
    %257 = vector.broadcast %cst_72 : f32 to vector<16x1xf32>
    %258 = arith.divf %256, %257 : vector<16x1xf32>
    %259 = vector.broadcast %258 : vector<16x1xf32> to vector<16x128xf32>
    %260 = arith.subf %254, %259 : vector<16x128xf32>
    %261 = arith.mulf %260, %260 : vector<16x128xf32>
    %cst_73 = arith.constant dense<0.000000e+00> : vector<16xf32>
    %262 = vector.multi_reduction <add>, %261, %cst_73 [1] : vector<16x128xf32> to vector<16xf32>
    %263 = vector.shape_cast %262 : vector<16xf32> to vector<16x1xf32>
    %cst_74 = arith.constant 1.280000e+02 : f32
    %264 = vector.broadcast %cst_74 : f32 to vector<16x1xf32>
    %265 = arith.divf %263, %264 : vector<16x1xf32>
    %266 = vector.broadcast %258 : vector<16x1xf32> to vector<16x128xf32>
    %267 = arith.subf %254, %266 : vector<16x128xf32>
    %cst_75 = arith.constant 9.99999997E-7 : f32
    %268 = vector.broadcast %cst_75 : f32 to vector<16x1xf32>
    %269 = arith.addf %265, %268 : vector<16x1xf32>
    %270 = math.rsqrt %269 : vector<16x1xf32>
    %271 = vector.broadcast %270 : vector<16x1xf32> to vector<16x128xf32>
    %272 = arith.mulf %267, %271 : vector<16x128xf32>
    %273 = vector.broadcast %8 : vector<1x128xf32> to vector<16x128xf32>
    %274 = arith.mulf %272, %273 : vector<16x128xf32>
    %275 = vector.broadcast %9 : vector<1x128xf32> to vector<16x128xf32>
    %276 = arith.addf %274, %275 : vector<16x128xf32>
    %c0_76 = arith.constant 0 : index
    %c0_77 = arith.constant 0 : index
    %c0_78 = arith.constant 0 : index
    %277 = vector.load %arg10[%c0_76, %c0_77, %c0_78] : memref<1x128x256xbf16, #tpu.memory_space<vmem>>, vector<1x128x256xbf16>
    %278 = vector.shape_cast %277 : vector<1x128x256xbf16> to vector<128x256xbf16>
    %c0_79 = arith.constant 0 : index
    %c0_80 = arith.constant 0 : index
    %c0_81 = arith.constant 0 : index
    %279 = vector.load %arg11[%c0_79, %c0_80, %c0_81] : memref<1x1x256xf32, #tpu.memory_space<vmem>>, vector<1x1x256xf32>
    %280 = vector.shape_cast %279 : vector<1x1x256xf32> to vector<1x256xf32>
    %281 = arith.truncf %276 : vector<16x128xf32> to vector<16x128xbf16>
    %cst_82 = arith.constant dense<0.000000e+00> : vector<16x256xf32>
    %282 = tpu.matmul %281, %278, %cst_82 {dimension_numbers = #tpu.dot_dimension_numbers<[1], [0], [0], [1], [0, 0, 1, 1], [], []>} : vector<16x128xbf16>, vector<128x256xbf16>, vector<16x256xf32> -> vector<16x256xf32>
    %283 = vector.broadcast %280 : vector<1x256xf32> to vector<16x256xf32>
    %284 = arith.addf %282, %283 : vector<16x256xf32>
    %cst_83 = arith.constant 5.000000e-01 : f32
    %285 = vector.broadcast %cst_83 : f32 to vector<16x256xf32>
    %286 = arith.mulf %285, %284 : vector<16x256xf32>
    %cst_84 = arith.constant 0.707106769 : f32
    %287 = vector.broadcast %cst_84 : f32 to vector<16x256xf32>
    %288 = arith.mulf %284, %287 : vector<16x256xf32>
    %289 = math.erf %288 : vector<16x256xf32>
    %cst_85 = arith.constant 1.000000e+00 : f32
    %290 = vector.broadcast %cst_85 : f32 to vector<16x256xf32>
    %291 = arith.addf %290, %289 : vector<16x256xf32>
    %292 = arith.mulf %286, %291 : vector<16x256xf32>
    %c0_86 = arith.constant 0 : index
    %c0_87 = arith.constant 0 : index
    %c0_88 = arith.constant 0 : index
    %293 = vector.load %arg12[%c0_86, %c0_87, %c0_88] : memref<1x256x128xbf16, #tpu.memory_space<vmem>>, vector<1x256x128xbf16>
    %294 = vector.shape_cast %293 : vector<1x256x128xbf16> to vector<256x128xbf16>
    %c0_89 = arith.constant 0 : index
    %c0_90 = arith.constant 0 : index
    %c0_91 = arith.constant 0 : index
    %295 = vector.load %arg13[%c0_89, %c0_90, %c0_91] : memref<1x1x128xf32, #tpu.memory_space<vmem>>, vector<1x1x128xf32>
    %296 = vector.shape_cast %295 : vector<1x1x128xf32> to vector<1x128xf32>
    %297 = arith.truncf %292 : vector<16x256xf32> to vector<16x256xbf16>
    %cst_92 = arith.constant dense<0.000000e+00> : vector<16x128xf32>
    %298 = tpu.matmul %297, %294, %cst_92 {dimension_numbers = #tpu.dot_dimension_numbers<[1], [0], [0], [1], [0, 0, 1, 1], [], []>} : vector<16x256xbf16>, vector<256x128xbf16>, vector<16x128xf32> -> vector<16x128xf32>
    %299 = vector.broadcast %296 : vector<1x128xf32> to vector<16x128xf32>
    %300 = arith.addf %298, %299 : vector<16x128xf32>
    %301 = arith.addf %254, %300 : vector<16x128xf32>
    %c0_93 = arith.constant 0 : index
    %c0_94 = arith.constant 0 : index
    %302 = vector.load %arg18[%c0_93, %c0_94] : memref<16x128xf32, #tpu.memory_space<vmem>>, vector<16x128xf32>
    tpu.vector_store %arg18[%c0_93, %c0_94], %301 {strides = array<i32>} : memref<16x128xf32, #tpu.memory_space<vmem>>, vector<16x128xf32>,
    %c1_i32 = arith.constant 1 : i32
    %303 = arith.cmpi eq, %arg0, %c1_i32 : i32
    %304 = arith.extui %303 : i1 to i32
    %c0_i32_95 = arith.constant 0 : i32
    %305 = arith.cmpi ne, %304, %c0_i32_95 : i32
    scf.if %305 {
      %c0_96 = arith.constant 0 : index
      %c0_97 = arith.constant 0 : index
      %306 = vector.load %arg14[%c0_96, %c0_97] : memref<2x128xf32, #tpu.memory_space<vmem>>, vector<1x128xf32>
      %c1 = arith.constant 1 : index
      %c0_98 = arith.constant 0 : index
      %307 = vector.load %arg14[%c1, %c0_98] : memref<2x128xf32, #tpu.memory_space<vmem>>, vector<1x128xf32>
      %308 = vector.extract_strided_slice %301 {offsets = [0, 0], sizes = [1, 128], strides = [1, 1]} : vector<16x128xf32> to vector<1x128xf32>
      %309 = vector.extract_strided_slice %301 {offsets = [8, 0], sizes = [1, 128], strides = [1, 1]} : vector<16x128xf32> to vector<1x128xf32>
      %310 = tpu.concatenate %308, %309 in 0 : vector<1x128xf32>, vector<1x128xf32> -> vector<2x128xf32>
      %cst_99 = arith.constant dense<0.000000e+00> : vector<2xf32>
      %311 = vector.multi_reduction <add>, %310, %cst_99 [1] : vector<2x128xf32> to vector<2xf32>
      %312 = vector.shape_cast %311 : vector<2xf32> to vector<2x1xf32>
      %cst_100 = arith.constant 1.280000e+02 : f32
      %313 = vector.broadcast %cst_100 : f32 to vector<2x1xf32>
      %314 = arith.divf %312, %313 : vector<2x1xf32>
      %315 = vector.broadcast %314 : vector<2x1xf32> to vector<2x128xf32>
      %316 = arith.subf %310, %315 : vector<2x128xf32>
      %317 = arith.mulf %316, %316 : vector<2x128xf32>
      %cst_101 = arith.constant dense<0.000000e+00> : vector<2xf32>
      %318 = vector.multi_reduction <add>, %317, %cst_101 [1] : vector<2x128xf32> to vector<2xf32>
      %319 = vector.shape_cast %318 : vector<2xf32> to vector<2x1xf32>
      %cst_102 = arith.constant 1.280000e+02 : f32
      %320 = vector.broadcast %cst_102 : f32 to vector<2x1xf32>
      %321 = arith.divf %319, %320 : vector<2x1xf32>
      %322 = vector.broadcast %314 : vector<2x1xf32> to vector<2x128xf32>
      %323 = arith.subf %310, %322 : vector<2x128xf32>
      %cst_103 = arith.constant 9.99999997E-7 : f32
      %324 = vector.broadcast %cst_103 : f32 to vector<2x1xf32>
      %325 = arith.addf %321, %324 : vector<2x1xf32>
      %326 = math.rsqrt %325 : vector<2x1xf32>
      %327 = vector.broadcast %326 : vector<2x1xf32> to vector<2x128xf32>
      %328 = arith.mulf %323, %327 : vector<2x128xf32>
      %329 = vector.broadcast %306 : vector<1x128xf32> to vector<2x128xf32>
      %330 = arith.mulf %328, %329 : vector<2x128xf32>
      %331 = vector.broadcast %307 : vector<1x128xf32> to vector<2x128xf32>
      %332 = arith.addf %330, %331 : vector<2x128xf32>
      %c0_104 = arith.constant 0 : index
      %c0_105 = arith.constant 0 : index
      %333 = vector.load %arg15[%c0_104, %c0_105] : memref<128x128xbf16, #tpu.memory_space<vmem>>, vector<128x128xbf16>
      %c0_106 = arith.constant 0 : index
      %c0_107 = arith.constant 0 : index
      %334 = vector.load %arg16[%c0_106, %c0_107] : memref<1x128xf32, #tpu.memory_space<vmem>>, vector<1x128xf32>
      %335 = arith.truncf %332 : vector<2x128xf32> to vector<2x128xbf16>
      %cst_108 = arith.constant dense<0.000000e+00> : vector<2x128xf32>
      %336 = tpu.matmul %335, %333, %cst_108 {dimension_numbers = #tpu.dot_dimension_numbers<[1], [0], [0], [1], [0, 0, 1, 1], [], []>} : vector<2x128xbf16>, vector<128x128xbf16>, vector<2x128xf32> -> vector<2x128xf32>
      %337 = vector.broadcast %334 : vector<1x128xf32> to vector<2x128xf32>
      %338 = arith.addf %336, %337 : vector<2x128xf32>
      %cst_109 = arith.constant 0.000000e+00 : f32
      %339 = vector.broadcast %cst_109 : f32 to vector<6x128xf32>
      %340 = tpu.concatenate %338, %339 in 0 : vector<2x128xf32>, vector<6x128xf32> -> vector<8x128xf32>
      %c0_110 = arith.constant 0 : index
      %c0_111 = arith.constant 0 : index
      %341 = vector.load %arg17[%c0_110, %c0_111] : memref<8x128xf32, #tpu.memory_space<vmem>>, vector<8x128xf32>
      tpu.vector_store %arg17[%c0_110, %c0_111], %340 {strides = array<i32>} : memref<8x128xf32, #tpu.memory_space<vmem>>, vector<8x128xf32>,
    } else {
    }
    return
  }
  func.func @transform_0(%arg0: i32) -> (i32, i32) {
    %c0_i32 = arith.constant 0 : i32
    %c0_i32_0 = arith.constant 0 : i32
    %c0_i32_1 = arith.constant 0 : i32
    return %c0_i32, %c0_i32_0 : i32, i32
  }
  func.func @transform_1(%arg0: i32) -> (i32, i32) {
    %c0_i32 = arith.constant 0 : i32
    %c0_i32_0 = arith.constant 0 : i32
    %c0_i32_1 = arith.constant 0 : i32
    return %c0_i32, %c0_i32_0 : i32, i32
  }
  func.func @transform_2(%arg0: i32) -> (i32, i32) {
    %c0_i32 = arith.constant 0 : i32
    %c0_i32_0 = arith.constant 0 : i32
    %c0_i32_1 = arith.constant 0 : i32
    return %c0_i32, %c0_i32_0 : i32, i32
  }
  func.func @transform_3(%arg0: i32) -> (i32, i32) {
    %c0_i32 = arith.constant 0 : i32
    %c0_i32_0 = arith.constant 0 : i32
    %c0_i32_1 = arith.constant 0 : i32
    return %c0_i32, %c0_i32_0 : i32, i32
  }
  func.func @transform_4(%arg0: i32) -> (i32, i32, i32) {
    %c0_i32 = arith.constant 0 : i32
    %c0_i32_0 = arith.constant 0 : i32
    %c0_i32_1 = arith.constant 0 : i32
    return %arg0, %c0_i32, %c0_i32_0 : i32, i32, i32
  }
  func.func @transform_5(%arg0: i32) -> (i32, i32, i32) {
    %c0_i32 = arith.constant 0 : i32
    %c0_i32_0 = arith.constant 0 : i32
    %c0_i32_1 = arith.constant 0 : i32
    return %arg0, %c0_i32, %c0_i32_0 : i32, i32, i32
  }
  func.func @transform_6(%arg0: i32) -> (i32, i32, i32) {
    %c0_i32 = arith.constant 0 : i32
    %c0_i32_0 = arith.constant 0 : i32
    %c0_i32_1 = arith.constant 0 : i32
    return %arg0, %c0_i32, %c0_i32_0 : i32, i32, i32
  }
  func.func @transform_7(%arg0: i32) -> (i32, i32, i32) {
    %c0_i32 = arith.constant 0 : i32
    %c0_i32_0 = arith.constant 0 : i32
    %c0_i32_1 = arith.constant 0 : i32
    return %arg0, %c0_i32, %c0_i32_0 : i32, i32, i32
  }
  func.func @transform_8(%arg0: i32) -> (i32, i32, i32) {
    %c0_i32 = arith.constant 0 : i32
    %c0_i32_0 = arith.constant 0 : i32
    %c0_i32_1 = arith.constant 0 : i32
    return %arg0, %c0_i32, %c0_i32_0 : i32, i32, i32
  }
  func.func @transform_9(%arg0: i32) -> (i32, i32, i32) {
    %c0_i32 = arith.constant 0 : i32
    %c0_i32_0 = arith.constant 0 : i32
    %c0_i32_1 = arith.constant 0 : i32
    return %arg0, %c0_i32, %c0_i32_0 : i32, i32, i32
  }
  func.func @transform_10(%arg0: i32) -> (i32, i32, i32) {
    %c0_i32 = arith.constant 0 : i32
    %c0_i32_0 = arith.constant 0 : i32
    %c0_i32_1 = arith.constant 0 : i32
    return %arg0, %c0_i32, %c0_i32_0 : i32, i32, i32
  }
  func.func @transform_11(%arg0: i32) -> (i32, i32, i32) {
    %c0_i32 = arith.constant 0 : i32
    %c0_i32_0 = arith.constant 0 : i32
    %c0_i32_1 = arith.constant 0 : i32
    return %arg0, %c0_i32, %c0_i32_0 : i32, i32, i32
  }
  func.func @transform_12(%arg0: i32) -> (i32, i32, i32) {
    %c0_i32 = arith.constant 0 : i32
    %c0_i32_0 = arith.constant 0 : i32
    %c0_i32_1 = arith.constant 0 : i32
    return %arg0, %c0_i32, %c0_i32_0 : i32, i32, i32
  }
  func.func @transform_13(%arg0: i32) -> (i32, i32) {
    %c0_i32 = arith.constant 0 : i32
    %c0_i32_0 = arith.constant 0 : i32
    %c0_i32_1 = arith.constant 0 : i32
    return %c0_i32, %c0_i32_0 : i32, i32
  }
  func.func @transform_14(%arg0: i32) -> (i32, i32) {
    %c0_i32 = arith.constant 0 : i32
    %c0_i32_0 = arith.constant 0 : i32
    %c0_i32_1 = arith.constant 0 : i32
    return %c0_i32, %c0_i32_0 : i32, i32
  }
  func.func @transform_15(%arg0: i32) -> (i32, i32) {
    %c0_i32 = arith.constant 0 : i32
    %c0_i32_0 = arith.constant 0 : i32
    %c0_i32_1 = arith.constant 0 : i32
    return %c0_i32, %c0_i32_0 : i32, i32
  }
  func.func @transform_16(%arg0: i32) -> (i32, i32) {
    %c0_i32 = arith.constant 0 : i32
    %c0_i32_0 = arith.constant 0 : i32
    %c0_i32_1 = arith.constant 0 : i32
    return %c0_i32, %c0_i32_0 : i32, i32
  }
}

</mosaic_0001>

<bundles_post_ra>
// kernel: vit_forward.1
= control target key start
LH: loop header
LB: loop body
LE: loop exit
PB: predicated region body
PF: predicated region fallthrough
CT: control target
= control target key end

     0   :  { %s3983_s21 = smov 0   ;;  %s4578_s0 = inlined_call_operand.vmem [shape: f32[8,768], index: 0, kind: input, shape index: {}]   ;;  %s4579_s1 = inlined_call_operand.vmem [shape: bf16[768,128], index: 1, kind: input, shape index: {}]   ;;  %s4580_s2 = inlined_call_operand.vmem [shape: f32[1,128], index: 2, kind: input, shape index: {}]   ;;  %s4581_s3 = inlined_call_operand.vmem [shape: f32[8,128], index: 3, kind: input, shape index: {}]   ;;  %s4582_s4 = inlined_call_operand.vmem [shape: f32[2,4,128], index: 4, kind: input, shape index: {}]   ;;  %s4583_s5 = inlined_call_operand.vmem [shape: bf16[2,128,384], index: 5, kind: input, shape index: {}]   ;;  %s4584_s6 = inlined_call_operand.vmem [shape: f32[2,1,384], index: 6, kind: input, shape index: {}]   ;;  %s4585_s7 = inlined_call_operand.vmem [shape: bf16[2,128,128], index: 7, kind: input, shape index: {}]   ;;  %s4586_s8 = inlined_call_operand.vmem [shape: f32[2,1,128], index: 8, kind: input, shape index: {}]   ;;  %s4587_s9 = inlined_call_operand.vmem [shape: bf16[2,128,256], index: 9, kind: input, shape index: {}]   ;;  %s4588_s10 = inlined_call_operand.vmem [shape: f32[2,1,256], index: 10, kind: input, shape index: {}]   ;;  %s4589_s11 = inlined_call_operand.vmem [shape: bf16[2,256,128], index: 11, kind: input, shape index: {}]   ;;  %s4590_s12 = inlined_call_operand.vmem [shape: f32[2,1,128], index: 12, kind: input, shape index: {}]   ;;  %s4591_s13 = inlined_call_operand.vmem [shape: f32[2,128], index: 13, kind: input, shape index: {}]   ;;  %s4592_s14 = inlined_call_operand.vmem [shape: bf16[128,128], index: 14, kind: input, shape index: {}]   ;;  %s4593_s15 = inlined_call_operand.vmem [shape: f32[1,128], index: 15, kind: input, shape index: {}]   ;;  %s4594_s16 = inlined_call_operand.vmem [shape: f32[8,128], index: 16, kind: output, shape index: {}]  }
   0x1   :  { %4599 = sst [smem:[#allocation4_spill]] %s4578_s0 }
   0x2   :  { %4600 = sst [smem:[#allocation5_spill]] %s4582_s4 }
   0x3   :  { %4601 = sst [smem:[#allocation6_spill]] %s4583_s5 }
   0x4   :  { %4602 = sst [smem:[#allocation7_spill]] %s4591_s13 }
   0x5   :  { %4603 = sst [smem:[#allocation8_spill]] %s4592_s14 }
   0x6   :  { %4604 = sst [smem:[#allocation9_spill]] %s4593_s15 }
   0x7   :  { %4605 = sst [smem:[#allocation10_spill]] %s4594_s16 }
   0x8 LB: > { %4606 = sst [smem:[#allocation3_spill]] %s3888_s21  ;;  %s3989_s22 = sadd.s32 4294967295, %s3888_s21   ;;  %s3888_s21 = sphi %s3983_s21, %s26_s21  }
   0x9   : > { %p3199_p0 = scmp.ge.s32.totalorder %s3888_s21, 1  ;;  %p530_p1 = scmp.lt.s32.totalorder %s3888_s21, 3 }
   0xb   : > { %p531_p2 = pnand %p3199_p0, %p530_p1 }
   0xc   : > { %p608_p3 = scmp.lt.s32.totalorder (!%p531_p2), %s3989_s22, 1  ;;  %s4607_s4 = sld [smem:[#allocation5_spill]] (!%p531_p2) }
   0xd   : > { %534 = sbr.rel (%p531_p2) target bundleno = 3863 (0xf17), region = 84  ;;  %s4608_s5 = sld [smem:[#allocation6_spill]] (!%p531_p2) }
   0xe   : > { %p3209_p4 = scmp.ne.s32.totalorder (!%p531_p2), %s3989_s22, 0 }
  0x14   : > { %s3995_s23 = scalar_select %p608_p3, %s3989_s22, 1 }
  0x15   : > { %v3679_v0 = vld [vmem:[%s4579_s1 + $0x40] sm:$0xff] (!%p3209_p4)   ;;  %v3683_v4 = vld [vmem:[%s4579_s1 + $0x48] sm:$0xff] (!%p3209_p4)   ;;  %v3687_v8 = vld [vmem:[%s4579_s1 + $0x50] sm:$0xff] (!%p3209_p4)   ;;  %vm1178_vm0 = vcmask (!%p3209_p4), 1040384   ;;  %vm1180_vm1 = vcmask (!%p3209_p4), 1044480  }
  0x16   : > { %s3200_s24 = sshll.u32 %s3995_s23, 2  ;;  %s3661_s25 = smul.u32 192, %s3995_s23  ;;  %v3680_v1 = vld [vmem:[%s4579_s1] sm:$0xff] (!%p3209_p4)   ;;  %3358 = vmatprep.subr.bf16.mxu0 (!%p3209_p4), %v3679_v0  ;;  %v3684_v5 = vld [vmem:[%s4579_s1 + $0x8] sm:$0xff] (!%p3209_p4)   ;;  %v3688_v9 = vld [vmem:[%s4579_s1 + $0x10] sm:$0xff] (!%p3209_p4)  }
  0x17   : > { %s4002_s28 = scalar_lea.vmem %s4607_s4, %s3200_s24  ;;  %s3662_s29 = smul.u32 3, %s3995_s23  ;;  %v3681_v2 = vld [vmem:[%s4579_s1 + $0xc0] sm:$0xff] (!%p3209_p4)   ;;  %3359 = vmatpush3.bf16.msra.mxu0 (!%p3209_p4), %v3680_v1  ;;  %v3685_v6 = vld [vmem:[%s4579_s1 + $0xc8] sm:$0xff] (!%p3209_p4)   ;;  %v3689_v10 = vld [vmem:[%s4579_s1 + $0xd0] sm:$0xff] (!%p3209_p4)  }
  0x18   : > { %s4008_s17 = scalar_lea.vmem %s4608_s5, %s3661_s25  ;;  %s3355_s18 = sshll.u32 %s3995_s23, 6  ;;  %v3682_v3 = vld [vmem:[%s4579_s1 + $0x80] sm:$0xff] (!%p3209_p4)   ;;  %3380 = vmatprep.subr.bf16.mxu1 (!%p3209_p4), %v3681_v2  ;;  %3360 = vmatprep.subr.bf16.mxu0 (!%p3209_p4), %v3683_v4  ;;  %v3686_v7 = vld [vmem:[%s4579_s1 + $0x88] sm:$0xff] (!%p3209_p4)   ;;  %v3690_v11 = vld [vmem:[%s4579_s1 + $0x90] sm:$0xff] (!%p3209_p4)  }
  0x19   : > { %s4014_s21 = scalar_lea.vmem %s4584_s6, %s3662_s29  ;;  %s4019_s13 = scalar_lea.vmem %s4585_s7, %s3355_s18  ;;  %3381 = vmatpush3.bf16.msra.mxu1 (!%p3209_p4), %v3682_v3  ;;  %v3691_v12 = vld [vmem:[%s4579_s1 + $0x58] sm:$0xff] (!%p3209_p4)   ;;  %v3695_v16 = vld [vmem:[%s4579_s1 + $0x60] sm:$0xff] (!%p3209_p4)   ;;  %v3699_v20 = vld [vmem:[%s4579_s1 + $0x68] sm:$0xff] (!%p3209_p4)  }
  0x1a   : > { %s3356_s4 = sshll.u32 %s3995_s23, 7  ;;  %s3206_s0 = sshll.u32 %s3995_s23, 1  ;;  %3382 = vmatprep.subr.bf16.mxu1 (!%p3209_p4), %v3685_v6  ;;  %v3692_v13 = vld [vmem:[%s4579_s1 + $0x18] sm:$0xff] (!%p3209_p4)   ;;  %v3696_v17 = vld [vmem:[%s4579_s1 + $0x20] sm:$0xff] (!%p3209_p4)   ;;  %v3700_v21 = vld [vmem:[%s4579_s1 + $0x28] sm:$0xff] (!%p3209_p4)  }
  0x1b   : > { %s4029_s25 = scalar_lea.vmem %s4587_s9, %s3356_s4  ;;  %s4035_s29 = scalar_lea.vmem %s4588_s10, %s3206_s0  ;;  %3361 = vmatpush3.bf16.msra.mxu0 (!%p3209_p4), %v3684_v5  ;;  %v3693_v14 = vld [vmem:[%s4579_s1 + $0xd8] sm:$0xff] (!%p3209_p4)   ;;  %v3697_v18 = vld [vmem:[%s4579_s1 + $0xe0] sm:$0xff] (!%p3209_p4)   ;;  %v3701_v22 = vld [vmem:[%s4579_s1 + $0xe8] sm:$0xff] (!%p3209_p4)  }
  0x1c   : > { %s4040_s16 = scalar_lea.vmem %s4589_s11, %s3356_s4  ;;  %s645_s24 = scalar_lea.vmem %s4590_s12, %s3995_s23  ;;  %3362 = vmatprep.subr.bf16.mxu0 (!%p3209_p4), %v3687_v8  ;;  %v3694_v15 = vld [vmem:[%s4579_s1 + $0x98] sm:$0xff] (!%p3209_p4)   ;;  %v3698_v19 = vld [vmem:[%s4579_s1 + $0xa0] sm:$0xff] (!%p3209_p4)   ;;  %v3702_v23 = vld [vmem:[%s4579_s1 + $0xa8] sm:$0xff] (!%p3209_p4)  }
  0x1d   : > { %650 = sbr.rel (%p3209_p4) target bundleno = 310 (0x136), region = 88  ;;  %3383 = vmatpush3.bf16.msra.mxu1 (!%p3209_p4), %v3686_v7  ;;  %v3703_v24 = vld [vmem:[%s4579_s1 + $0x70] sm:$0xff] (!%p3209_p4)   ;;  %v3707_v28 = vld [vmem:[%s4579_s1 + $0x78] sm:$0xff] (!%p3209_p4)   ;;  %s4609_s18 = sld [smem:[#allocation4_spill]] (!%p3209_p4)  ;;  %v3711_v36 = vld [vmem:[%s4579_s1 + $0x140] sm:$0xff] (!%p3209_p4)  }
  0x1e   : > { %3384 = vmatprep.subr.bf16.mxu1 (!%p3209_p4), %v3689_v10  ;;  %v3704_v25 = vld [vmem:[%s4579_s1 + $0x30] sm:$0xff] (!%p3209_p4)   ;;  %v3708_v29 = vld [vmem:[%s4579_s1 + $0x38] sm:$0xff] (!%p3209_p4)   ;;  %v3712_v39 = vld [vmem:[%s4579_s1 + $0x100] sm:$0xff] (!%p3209_p4)  }
  0x1f   : > { %3363 = vmatpush3.bf16.msra.mxu0 (!%p3209_p4), %v3688_v9  ;;  %v3705_v26 = vld [vmem:[%s4579_s1 + $0xf0] sm:$0xff] (!%p3209_p4)   ;;  %v3709_v30 = vld [vmem:[%s4579_s1 + $0xf8] sm:$0xff] (!%p3209_p4)   ;;  %v3713_v42 = vld [vmem:[%s4579_s1 + $0x148] sm:$0xff] (!%p3209_p4)  }
  0x20   : > { %3364 = vmatprep.subr.bf16.mxu0 (!%p3209_p4), %v3691_v12  ;;  %v3706_v27 = vld [vmem:[%s4579_s1 + $0xb0] sm:$0xff] (!%p3209_p4)   ;;  %v3710_v33 = vld [vmem:[%s4579_s1 + $0xb8] sm:$0xff] (!%p3209_p4)   ;;  %v3714_v43 = vld [vmem:[%s4579_s1 + $0x108] sm:$0xff] (!%p3209_p4)  }
  0x21   : > { %3385 = vmatpush3.bf16.msra.mxu1 (!%p3209_p4), %v3690_v11  ;;  %v3715_v44 = vld [vmem:[%s4579_s1 + $0x150] sm:$0xff] (!%p3209_p4)   ;;  %v3717_v46 = vld [vmem:[%s4579_s1 + $0x158] sm:$0xff] (!%p3209_p4)   ;;  %v3719_v48 = vld [vmem:[%s4579_s1 + $0x160] sm:$0xff] (!%p3209_p4)  }
  0x22   : > { %3386 = vmatprep.subr.bf16.mxu1 (!%p3209_p4), %v3693_v14  ;;  %v3716_v45 = vld [vmem:[%s4579_s1 + $0x110] sm:$0xff] (!%p3209_p4)   ;;  %v3718_v47 = vld [vmem:[%s4579_s1 + $0x118] sm:$0xff] (!%p3209_p4)   ;;  %v3720_v49 = vld [vmem:[%s4579_s1 + $0x120] sm:$0xff] (!%p3209_p4)  }
  0x23   : > { %3365 = vmatpush3.bf16.msra.mxu0 (!%p3209_p4), %v3692_v13  ;;  %v652_v31 = vld [vmem:[%s4609_s18 + $0x8] sm:$0xff] (!%p3209_p4)  ;;  %v651_v34 = vld [vmem:[%s4609_s18] sm:$0xff] (!%p3209_p4)  ;;  %v654_v37 = vld [vmem:[%s4609_s18 + $0x18] sm:$0xff] (!%p3209_p4) }
  0x24   : > { %3366 = vmatprep.subr.bf16.mxu0 %v3695_v16  ;;  %v755_v32 = vpack.c.bf16 %v652_v31, %v652_v31  ;;  %v754_v35 = vpack.c.bf16 %v651_v34, %v651_v34  ;;  %v757_v38 = vpack.c.bf16 %v654_v37, %v654_v37  ;;  %v653_v40 = vld [vmem:[%s4609_s18 + $0x10] sm:$0xff]  ;;  %v3721_v50 = vld [vmem:[%s4579_s1 + $0x168] sm:$0xff]   ;;  %v3725_v56 = vld [vmem:[%s4579_s1 + $0x178] sm:$0xff]  }
  0x25   : > { %3387 = vmatpush3.bf16.msra.mxu1 %v3694_v15  ;;  %v756_v41 = vpack.c.bf16 %v653_v40, %v653_v40  ;;  %v656_v51 = vld [vmem:[%s4609_s18 + $0x28] sm:$0xff]  ;;  %v3723_v54 = vld [vmem:[%s4579_s1 + $0x170] sm:$0xff]   ;;  %v3726_v57 = vld [vmem:[%s4579_s1 + $0x138] sm:$0xff]  }
  0x26   : > { %3388 = vmatprep.subr.bf16.mxu1 %v3697_v18  ;;  %1086 = vmatprep.mubr.bf16.mxu0 %v755_v32  ;;  %v759_v52 = vpack.c.bf16 %v656_v51, %v656_v51  ;;  %v3722_v53 = vld [vmem:[%s4579_s1 + $0x128] sm:$0xff]   ;;  %v3724_v55 = vld [vmem:[%s4579_s1 + $0x130] sm:$0xff]   ;;  %v655_v58 = vld [vmem:[%s4609_s18 + $0x20] sm:$0xff] }
  0x27   : > { %3367 = vmatpush3.bf16.msra.mxu0 %v3696_v17  ;;  %1126 = vmatprep.mubr.bf16.mxu1 %v757_v38  ;;  %v758_v59 = vpack.c.bf16 %v655_v58, %v655_v58  ;;  %v3210_v61 = vld [vmem:[%s4580_s2] ss:$0 sm:$0xff] }
  0x28   : > { %3368 = vmatprep.subr.bf16.mxu0 %v3699_v20  ;;  %v1174_v17 = vld [vmem:[%s4581_s3] sm:$0xff] }
  0x29   : > { %3389 = vmatpush3.bf16.msra.mxu1 %v3698_v19 }
  0x2a   : > { %3390 = vmatprep.subr.bf16.mxu1 %v3701_v22 }
  0x2b   : > { %3369 = vmatpush3.bf16.msra.mxu0 %v3700_v21 }
  0x2c   : > { %3370 = vmatprep.subr.bf16.mxu0 %v3703_v24 }
  0x2d   : > { %3391 = vmatpush3.bf16.msra.mxu1 %v3702_v23 }
  0x2e   : > { %3392 = vmatprep.subr.bf16.mxu1 %v3705_v26 }
  0x2f   : > { %3371 = vmatpush3.bf16.msra.mxu0 %v3704_v25 }
  0x30   : > { %3372 = vmatprep.subr.bf16.mxu0 %v3707_v28 }
  0x31   : > { %3393 = vmatpush3.bf16.msra.mxu1 %v3706_v27 }
  0x32   : > { %3394 = vmatprep.subr.bf16.mxu1 %v3709_v30 }
  0x33   : > { %3373 = vmatpush3.bf16.msra.mxu0 %v3708_v29 }
  0x34   : > { %3402 = vmatprep.subr.bf16.mxu0 %v3711_v36 }
  0x35   : > { %3395 = vmatpush3.bf16.msra.mxu1 %v3710_v33 }
  0x36   : > { %1087 = vmatmul.mubr.bf16.vlgmr.msra.gmra.mrb[0].mxu0 %v754_v35 }
  0x37   : > { %3403 = vmatpush3.bf16.msra.mxu0 %v3712_v39  ;;  %1166 = vmatprep.mubr.bf16.mxu0 %v759_v52 }
  0x38   : > { %1127 = vmatmul.mubr.bf16.vlgmr.msra.gmra.mrb[0].mxu1 %v756_v41  ;;  %3404 = vmatprep.subr.bf16.mxu0 %v3713_v42 }
  0x3b   : > { %3405 = vmatpush3.bf16.msra.mxu0 %v3714_v43 }
  0x3c   : > { %3406 = vmatprep.subr.bf16.mxu0 %v3715_v44 }
  0x3f   : > { %3407 = vmatpush3.bf16.msra.mxu0 %v3716_v45 }
  0x40   : > { %3408 = vmatprep.subr.bf16.mxu0 %v3717_v46 }
  0x43   : > { %3409 = vmatpush3.bf16.msra.mxu0 %v3718_v47 }
  0x44   : > { %3410 = vmatprep.subr.bf16.mxu0 %v3719_v48 }
  0x47   : > { %3411 = vmatpush3.bf16.msra.mxu0 %v3720_v49 }
  0x48   : > { %3412 = vmatprep.subr.bf16.mxu0 %v3721_v50 }
  0x4b   : > { %3413 = vmatpush3.bf16.msra.mxu0 %v3722_v53 }
  0x4c   : > { %3414 = vmatprep.subr.bf16.mxu0 %v3723_v54 }
  0x4f   : > { %3415 = vmatpush3.bf16.msra.mxu0 %v3724_v55 }
  0x50   : > { %3416 = vmatprep.subr.bf16.mxu0 %v3725_v56 }
  0x53   : > { %3417 = vmatpush3.bf16.msra.mxu0 %v3726_v57 }
  0x56   : > { %1167 = vmatmul.mubr.bf16.vlgmr.msra.gmra.mrb[4].mxu0 %v758_v59 }
 0x109   : > { %v3374_v60 = vpop.f32.mrb[0].mxu0 }
 0x10a   : > { %v3375_v62 = vpop.f32.mrb[1].mxu0 }
 0x10b   : > { %v3376_v63 = vadd.f32 %v3375_v62, %v3374_v60  ;;  %v3377_v0 = vpop.f32.mrb[2].mxu0  ;;  %v3396_v1 = vpop.f32.mrb[0].mxu1 }
 0x10c   : > { %v3378_v2 = vpop.f32.mrb[3].mxu0  ;;  %v3397_v4 = vpop.f32.mrb[1].mxu1 }
 0x10d   : > { %v1089_v3 = vadd.f32 %v3376_v63, %v3210_v61  ;;  %v3398_v5 = vadd.f32 %v3397_v4, %v3396_v1  ;;  %v3399_v6 = vpop.f32.mrb[2].mxu1 }
 0x10e   : > { %v3400_v7 = vpop.f32.mrb[3].mxu1 }
 0x10f   : > { %v1129_v8 = vadd.f32 %v3398_v5, %v1089_v3 }
 0x129   : > { %v3418_v9 = vpop.f32.mrb[4].mxu0 }
 0x12a   : > { %v3419_v10 = vpop.f32.mrb[5].mxu0 }
 0x12b   : > { %v3420_v11 = vadd.f32 %v3419_v10, %v3418_v9  ;;  %v3421_v12 = vpop.f32.mrb[6].mxu0 }
 0x12c   : > { %v3422_v13 = vpop.f32.mrb[7].mxu0 }
 0x12d   : > { %v1169_v14 = vadd.f32 %v3420_v11, %v1129_v8 }
 0x12f   : > { %v1176_v15 = vrot.slane %v1169_v14, 7  ;;  %v1183_v16 = vrot.slane %v1169_v14, 3 }
 0x131   : > { %v1179_v18 = vsel %vm1178_vm0, 0.0, %v1176_v15  ;;  %v1185_v19 = vsel %vm1178_vm0, 0.0, %v1183_v16 }
 0x132   : > { %v1181_v20 = vsel %vm1180_vm1, %v1179_v18, 0.0  ;;  %v1186_v21 = vsel %vm1180_vm1, %v1185_v19, 0.0 }
 0x133   : > { %v1182_v22 = vadd.f32 %v1181_v20, %v1174_v17  ;;  %v1187_v23 = vadd.f32 %v1186_v21, %v1174_v17 }
 0x135   : > { %1188 = vst [vmem:[#allocation2] sm:$0xff] %v1182_v22  ;;  %1189 = vst [vmem:[#allocation2 + $0x8] sm:$0xff] %v1187_v23 }
 0x136 PF: > { %v3742_v26 = vld [vmem:[%s4008_s17 + $0x4] ss:$12 sps:$4 sm:$0xff]   ;;  %v3744_v27 = vld [vmem:[%s4008_s17] ss:$12 sps:$4 sm:$0xff]   ;;  %v3890_v28 = vmov 0.0   ;;  %v3891_v54 = vmov 0   ;;  %v1216_v0 = vlaneseq  ;;  %s4610_s15 = scalar_lea.vmem %s4586_s8, %s3995_s23 }
 0x137   : > { %3505 = vmatprep.subr.bf16.mxu1 %v3890_v28  ;;  %v3745_v29 = vld [vmem:[%s4008_s17 + $0x8] ss:$12 sps:$4 sm:$0xff]   ;;  %1406 = vmatprep.subr.bf16.mxu0 %v3742_v26  ;;  %v3748_v39 = vld [vmem:[%s4008_s17 + $0x18] ss:$12 sps:$4 sm:$0xff]   ;;  %v3749_v40 = vld [vmem:[%s4008_s17 + $0x20] ss:$12 sps:$4 sm:$0xff]  }
 0x138   : > { %v3746_v30 = vld [vmem:[%s4008_s17 + $0x1c] ss:$12 sps:$4 sm:$0xff]   ;;  %1407 = vmatpush1.bf16.msra.mxu0 %v3744_v27  ;;  %3506 = vmatpush3.bf16.msra.mxu1 %v3745_v29  ;;  %v3750_v41 = vld [vmem:[%s4008_s17 + $0x34] ss:$12 sps:$4 sm:$0xff]   ;;  %v3753_v43 = vld [vmem:[%s4008_s17 + $0x38] ss:$12 sps:$4 sm:$0xff]  }
 0x139   : > { %1408 = vmatprep.subr.bf16.mxu0 %v3746_v30  ;;  %3507 = vmatprep.subr.bf16.mxu1 %v3890_v28  ;;  %v3752_v42 = vld [vmem:[%s4008_s17 + $0x30] ss:$12 sps:$4 sm:$0xff]   ;;  %v3754_v44 = vld [vmem:[%s4008_s17 + $0x4c] ss:$12 sps:$4 sm:$0xff]   ;;  %v3756_v45 = vld [vmem:[%s4008_s17 + $0x48] ss:$12 sps:$4 sm:$0xff]  }
 0x13a   : > { %v3757_v46 = vld [vmem:[%s4008_s17 + $0x50] ss:$12 sps:$4 sm:$0xff]   ;;  %v3760_v48 = vld [vmem:[%s4008_s17 + $0x60] ss:$12 sps:$4 sm:$0xff]   ;;  %v3761_v49 = vld [vmem:[%s4008_s17 + $0x68] ss:$12 sps:$4 sm:$0xff]   ;;  %1438 = vmatprep.mubr.bf16.mxu0 %v3891_v54 }
 0x13b   : > { %v3758_v47 = vld [vmem:[%s4008_s17 + $0x64] ss:$12 sps:$4 sm:$0xff]   ;;  %v3762_v50 = vld [vmem:[%s4008_s17 + $0x7c] ss:$12 sps:$4 sm:$0xff]   ;;  %v3765_v52 = vld [vmem:[%s4008_s17 + $0x80] ss:$12 sps:$4 sm:$0xff]  }
 0x13c   : > { %v1190_v24 = vld [vmem:[#allocation2] sm:$0xff]  ;;  %v1191_v25 = vld [vmem:[#allocation2 + $0x8] sm:$0xff]  ;;  %1409 = vmatpush1.bf16.msra.mxu0 %v3748_v39  ;;  %3508 = vmatpush3.bf16.msra.mxu1 %v3749_v40  ;;  %vm3892_vm2 = vmmov 0   ;;  %v3768_v55 = vld [vmem:[%s4008_s17 + $0x90] ss:$12 sps:$4 sm:$0xff]   ;;  %v4260_v3 = vshrl.u32 %v1216_v0, 7 }
 0x13d   : > { %1193 = vadd.xlane.f32.xlu0 %v1190_v24  ;;  %3509 = vmatprep.subr.bf16.mxu1 %v3890_v28  ;;  %v3764_v51 = vld [vmem:[%s4008_s17 + $0x78] ss:$12 sps:$4 sm:$0xff]   ;;  %v3766_v53 = vld [vmem:[%s4008_s17 + $0x94] ss:$12 sps:$4 sm:$0xff]   ;;  %v3773_v59 = vld [vmem:[%s4008_s17 + $0xb0] ss:$12 sps:$4 sm:$0xff]  }
 0x13e   : > { %1410 = vmatprep.subr.bf16.mxu0 %v3750_v41  ;;  %3521 = vmatprep.mubr.msk.bf16.mxu1 %vm3892_vm2, %v3890_v28  ;;  %v3769_v56 = vld [vmem:[%s4008_s17 + $0x98] ss:$12 sps:$4 sm:$0xff]   ;;  %v3772_v58 = vld [vmem:[%s4008_s17 + $0xa8] ss:$12 sps:$4 sm:$0xff]   ;;  %v4263_v4 = vsub.s32 0, %v4260_v3  ;;  %v4272_v9 = vsub.s32 1, %v4260_v3 }
 0x13f   : > { %v3770_v57 = vld [vmem:[%s4008_s17 + $0xac] ss:$12 sps:$4 sm:$0xff]   ;;  %v4266_v5 = vld [vmem:[%s4002_s28] sm:$0xf]  ;;  %v1273_v19 = vsub.s32 2, %v4260_v3  ;;  %vm1495_vm3 = vcmask 261120  }
 0x140   : > { %1411 = vmatpush1.bf16.msra.mxu0 %v3752_v42  ;;  %3510 = vmatpush3.bf16.msra.mxu1 %v3753_v43  ;;  %v1219_v8 = vrot.slane %v4266_v5, %v4263_v4  ;;  %v1225_v13 = vrot.slane %v4266_v5, %v4272_v9  ;;  %v1260_v18 = vld [vmem:[%s4014_s21] sm:$0x7]  ;;  %vm1563_vm4 = vcmask 1043456   ;;  %v4299_v43 = vand.u32 127, %v1216_v0  ;;  %s3893_s21 = smov 96   ;;  %s3894_s28 = smov 32  }
 0x141   : > { %1195 = vadd.xlane.f32.xlu0 %v1191_v25  ;;  %3511 = vmatprep.subr.bf16.mxu1 %v3890_v28  ;;  %v1270_v20 = vrot.slane %v1260_v18, %v4272_v9  ;;  %v1266_v23 = vrot.slane %v1260_v18, %v4263_v4  ;;  %vm1546_vm6 = vcmask 64512   ;;  %s3895_s17 = smov 64   ;;  %vm1959_vm7 = vcmask 523264   ;;  %p3341_p5 = scmp.ne.s32.totalorder %s3989_s22, 1 }
 0x142   : > { %1412 = vmatprep.subr.bf16.mxu0 %v3754_v44  ;;  %vm1492_vm5 = vcmp.lt.s32.totalorder %v4299_v43, 5  ;;  %vm1961_vm8 = vcmask 785408   ;;  %vm2938_vm9 = vcmask (!%p3341_p5), 1040384   ;;  %vm2940_vm10 = vcmask (!%p3341_p5), 1041408   ;;  %s4613_s22 = sld [smem:[#allocation9_spill]] (!%p3341_p5)  ;;  %s4614_s5 = sld [smem:[#allocation10_spill]] (!%p3341_p5) }
 0x143   : > { %vm3897_vm11 = vmmov (!%p3341_p5), 0  }
 0x144   : > { %1413 = vmatpush1.bf16.msra.mxu0 %v3756_v45  ;;  %3512 = vmatpush3.bf16.msra.mxu1 %v3757_v46 }
 0x145   : > { %3513 = vmatprep.subr.bf16.mxu1 %v3890_v28  ;;  %1414 = vmatprep.subr.bf16.mxu0 %v3758_v47 }
 0x148   : > { %1415 = vmatpush1.bf16.msra.mxu0 %v3760_v48  ;;  %3514 = vmatpush3.bf16.msra.mxu1 %v3761_v49 }
 0x149   : > { %1416 = vmatprep.subr.bf16.mxu0 %v3762_v50  ;;  %3515 = vmatprep.subr.bf16.mxu1 %v3890_v28 }
 0x14c   : > { %1417 = vmatpush1.bf16.msra.mxu0 %v3764_v51  ;;  %3516 = vmatpush3.bf16.msra.mxu1 %v3765_v52 }
 0x14d   : > { %1418 = vmatprep.subr.bf16.mxu0 %v3766_v53  ;;  %3517 = vmatprep.subr.bf16.mxu1 %v3890_v28 }
 0x150   : > { %1419 = vmatpush1.bf16.msra.mxu0 %v3768_v55  ;;  %3518 = vmatpush3.bf16.msra.mxu1 %v3769_v56 }
 0x151   : > { %1420 = vmatprep.subr.bf16.mxu0 %v3770_v57  ;;  %3519 = vmatprep.subr.bf16.mxu1 %v3890_v28 }
 0x154   : > { %1421 = vmatpush1.bf16.msra.mxu0 %v3772_v58  ;;  %3520 = vmatpush3.bf16.msra.mxu1 %v3773_v59 }
 0x155   : > { %3525 = vmatprep.subr.bf16.mxu1 %v3890_v28  ;;  %3549 = vmatprep.subr.bf16.mxu0 %v3890_v28 }
 0x1ca   : > { %v1194_v31 = vpop.xlane.xlu0 %1193 }
 0x1cb   : > { %v1198_v32 = vmul.f32 0.0078125, %v1194_v31 }
 0x1cd   : > { %v4221_v33 = vsub.f32 %v1190_v24, %v1198_v32  ;;  %v1274_v24 = vrot.slane %v1260_v18, %v1273_v19 }
 0x1ce   : > { %v1196_v34 = vpop.xlane.xlu0 %1195 }
 0x1cf   : > { %v1199_v35 = vmul.f32 0.0078125, %v1196_v34  ;;  %v1202_v36 = vmul.f32 %v4221_v33, %v4221_v33 }
 0x1d1   : > { %v4225_v37 = vsub.f32 %v1191_v25, %v1199_v35  ;;  %1204 = vadd.xlane.f32.xlu1 %v1202_v36 }
 0x1d3   : > { %v1203_v38 = vmul.f32 %v4225_v37, %v4225_v37 }
 0x1d5   : > { %1206 = vadd.xlane.f32.xlu1 %v1203_v38 }
 0x25e   : > { %v1205_v60 = vpop.xlane.xlu1 %1204 }
 0x25f   : > { %v1208_v61 = vmul.f32 0.0078125, %v1205_v60 }
 0x261   : > { %v1210_v62 = vadd.f32 1e-06, %v1208_v61 }
 0x262   : > { %v1207_v63 = vpop.xlane.xlu1 %1206 }
 0x263   : > { %3822 = vrsqrt.f32 %v1210_v62  ;;  %v1209_v1 = vmul.f32 0.0078125, %v1207_v63 }
 0x265   : > { %v1211_v2 = vadd.f32 1e-06, %v1209_v1 }
 0x267   : > { %3824 = vrsqrt.f32 %v1211_v2 }
 0x26d   : > { %v3823_v6 = vpop.eup %3822 }
 0x26e   : > { %v1214_v7 = vmul.f32 %v3823_v6, %v4221_v33 }
 0x270   : > { %v1220_v12 = vmul.f32 %v1219_v8, %v1214_v7 }
 0x271   : > { %v3825_v10 = vpop.eup %3824 }
 0x272   : > { %v1215_v11 = vmul.f32 %v3825_v10, %v4225_v37  ;;  %v1226_v15 = vadd.f32 %v1225_v13, %v1220_v12 }
 0x274   : > { %v1221_v14 = vmul.f32 %v1219_v8, %v1215_v11 }
 0x276   : > { %v1227_v16 = vadd.f32 %v1225_v13, %v1221_v14 }
 0x278   : > { %v1261_v17 = vpack.c.bf16 %v1227_v16, %v1226_v15 }
 0x27a   : > { %1439 = vmatmul.mubr.bf16.vlgmr.msra.gmra.mrb[0].mxu0 %v1261_v17  ;;  %3522 = vmatmul.mubr.bf16.vlgmr.msra.gmra.mrb[0].mxu1 %v1261_v17 }
 0x27b   : > { %3527 = vmatprep.mubr.msk.bf16.mxu1 %vm3892_vm2, %v3890_v28  ;;  %3551 = vmatprep.mubr.msk.bf16.mxu0 %vm3892_vm2, %v3890_v28 }
 0x34d   : > { %v1440_v21 = vpop.f32.mrb[0].mxu0  ;;  %v1483_v22 = vpop.f32.mrb[0].mxu1 }
 0x34e   : > { %v1442_v25 = vpop.f32.mrb[1].mxu0  ;;  %v3523_v26 = vpop.f32.mrb[1].mxu1  ;;  %v1484_v37 = vadd.f32 %v1483_v22, %v1274_v24  ;;  %v1441_v39 = vadd.f32 %v1440_v21, %v1266_v23 }
 0x34f   : > { %v1443_v27 = vadd.f32 %v1442_v25, %v1270_v20  ;;  %v1444_v29 = vpop.f32.mrb[2].mxu0  ;;  %v1486_v30 = vpop.f32.mrb[2].mxu1 }
 0x350   : > { %v1445_v31 = vadd.f32 %v1444_v29, %v1266_v23  ;;  %v4287_v32 = vadd.f32 %v1486_v30, %v1274_v24  ;;  %v1446_v33 = vpop.f32.mrb[3].mxu0  ;;  %v3524_v34 = vpop.f32.mrb[3].mxu1  ;;  %v4291_v40 = vpack.c.bf16 %v1484_v37, %v1484_v37  ;;  %v1493_v41 = vpack.c.bf16 %v1441_v39, %v1441_v39 }
 0x351   : > { %v1494_v35 = vpack.c.bf16 %v1443_v27, %v1443_v27  ;;  %v1447_v36 = vadd.f32 %v1446_v33, %v1270_v20 }
 0x352   : > { %v1565_v42 = vsel %vm1563_vm4, %v4291_v40, 0  ;;  %v1963_v58 = vpack.c.bf16 %v1445_v31, %v1445_v31 }
 0x353   : > { %v1500_v38 = vsel %vm1495_vm3, %v1494_v35, 0  ;;  %v1964_v51 = vpack.c.bf16 %v1447_v36, %v1447_v36 }
 0x354   : > { %3526 = vmatpush3.bf16.xpose.msra.mxu1 %v1500_v38 }
 0x355   : > { %3531 = vmatprep.subr.bf16.mxu1 %v3890_v28  ;;  %v1969_v12 = vsel %vm1495_vm3, %v1964_v51, 0 }
 0x35b   : > { %3528 = vmatmul.mubr.msk.bf16.vlgmr.msra.gmra.mrb[4].mxu1 %vm1495_vm3, %v1493_v41 }
 0x35c   : > { %3532 = vmatpush3.bf16.msra.mxu1 %v1565_v42  ;;  %3533 = vmatprep.mubr.msk.bf16.mxu1 %vm3892_vm2, %v3890_v28 }
 0x35d   : > { %3537 = vmatprep.subr.bf16.mxu1 %v3890_v28 }
 0x42e   : > { %v1536_v44 = vpop.f32.mrb[4].mxu1 }
 0x42f   : > { %v1542_v45 = vmul.f32 0.17677669, %v1536_v44  ;;  %v3529_v46 = vpop.f32.mrb[5].mxu1 }
 0x430   : > { %v1539_v47 = vpop.f32.mrb[6].mxu1 }
 0x431   : > { %v3530_v48 = vpop.f32.mrb[7].mxu1  ;;  %v1545_v49 = vsel %vm1492_vm5, %v1542_v45, -1e+30 }
 0x432   : > { %v1547_v50 = vsel %vm1546_vm6, %v1545_v49, -inf }
 0x433   : > { %1548 = vmax.xlane.f32.xlu0 %v1547_v50 }
 0x449   : > { %1611 = vrot.lane.b32.xlu0 %v1494_v35, %s3893_s21 }
 0x44d   : > { %1836 = vrot.lane.b32.xlu0 %v1494_v35, %s3894_s28 }
 0x451   : > { %2076 = vrot.lane.b32.xlu0 %v1964_v51, %s3893_s21 }
 0x455   : > { %2189 = vrot.lane.b32.xlu0 %v1964_v51, %s3895_s17 }
 0x459   : > { %2301 = vrot.lane.b32.xlu0 %v1964_v51, %s3894_s28 }
 0x4c0   : > { %v1549_v52 = vpop.xlane.xlu0 %1548 }
 0x4c1   : > { %v1550_v53 = vsub.f32 %v1545_v49, %v1549_v52 }
 0x4c3   : > { %v1551_v55 = vmul.f32 1.442695, %v1550_v53 }
 0x4c4   : > { %v1612_v61 = vpop.permute.xlu0 %1611 }
 0x4c5   : > { %3826 = vpow2.f32 %v1551_v55  ;;  %v1617_v7 = vsel %vm1495_vm3, %v1612_v61, 0 }
 0x4c8   : > { %v1837_v2 = vpop.permute.xlu0 %1836 }
 0x4c9   : > { %v1842_v10 = vsel %vm1495_vm3, %v1837_v2, 0 }
 0x4cc   : > { %v2077_v13 = vpop.permute.xlu0 %2076 }
 0x4cd   : > { %v2082_v14 = vsel %vm1495_vm3, %v2077_v13, 0 }
 0x4cf   : > { %v3827_v56 = vpop.eup %3826 }
 0x4d0   : > { %v1553_v57 = vsel %vm1546_vm6, %v3827_v56, 0.0  ;;  %v2190_v15 = vpop.permute.xlu0 %2189 }
 0x4d1   : > { %1554 = vadd.xlane.f32.xlu1 %v1553_v57  ;;  %v2195_v17 = vsel %vm1495_vm3, %v2190_v15, 0 }
 0x4d4   : > { %v2302_v18 = vpop.permute.xlu0 %2301 }
 0x4d5   : > { %v2307_v21 = vsel %vm1495_vm3, %v2302_v18, 0 }
 0x4e2   : > { %1608 = vrot.lane.b32.xlu1 %v1493_v41, %s3893_s21 }
 0x4e6   : > { %1724 = vrot.lane.b32.xlu1 %v1494_v35, %s3895_s17 }
 0x4ea   : > { %1722 = vrot.lane.b32.xlu1 %v1493_v41, %s3895_s17 }
 0x4ee   : > { %1834 = vrot.lane.b32.xlu1 %v1493_v41, %s3894_s28 }
 0x4f2   : > { %2073 = vrot.lane.b32.xlu1 %v1963_v58, %s3893_s21 }
 0x4f6   : > { %2187 = vrot.lane.b32.xlu1 %v1963_v58, %s3895_s17 }
 0x4fa   : > { %2299 = vrot.lane.b32.xlu1 %v1963_v58, %s3894_s28 }
 0x55e   : > { %v1555_v59 = vpop.xlane.xlu1 %1554 }
 0x55f   : > { %3828 = vrcp.f32 %v1555_v59 }
 0x562   : > { %v1609_v60 = vpop.permute.xlu1 %1608 }
 0x566   : > { %v1725_v62 = vpop.permute.xlu1 %1724 }
 0x567   : > { %v1730_v63 = vsel %vm1495_vm3, %v1725_v62, 0 }
 0x568   : > { %3550 = vmatpush3.bf16.xpose.msra.mxu0 %v1730_v63 }
 0x569   : > { %v3829_v0 = vpop.eup %3828  ;;  %3561 = vmatprep.subr.bf16.mxu0 %v3890_v28 }
 0x56a   : > { %v1557_v1 = vmul.f32 %v3829_v0, %v3827_v56  ;;  %v1723_v8 = vpop.permute.xlu1 %1722 }
 0x56c   : > { %v1558_v6 = vpack.c.bf16 %v1557_v1, %v1557_v1 }
 0x56e   : > { %3534 = vmatmul.mubr.msk.bf16.vlgmr.msra.gmra.mrb[8].mxu1 %vm1546_vm6, %v1558_v6  ;;  %v1835_v11 = vpop.permute.xlu1 %1834 }
 0x56f   : > { %3538 = vmatpush3.bf16.xpose.msra.mxu1 %v1617_v7  ;;  %3552 = vmatmul.mubr.msk.bf16.vlgmr.msra.gmra.mrb[4].mxu0 %vm1495_vm3, %v1723_v8 }
 0x570   : > { %3562 = vmatpush3.bf16.xpose.msra.mxu0 %v1842_v10  ;;  %3539 = vmatprep.mubr.msk.bf16.mxu1 %vm3892_vm2, %v3890_v28 }
 0x571   : > { %3563 = vmatprep.mubr.msk.bf16.mxu0 %vm3892_vm2, %v3890_v28  ;;  %3573 = vmatprep.subr.bf16.mxu0 %v3890_v28 }
 0x572   : > { %3543 = vmatprep.subr.bf16.mxu1 %v3890_v28  ;;  %v2074_v16 = vpop.permute.xlu1 %2073 }
 0x576   : > { %3540 = vmatmul.mubr.msk.bf16.vlgmr.msra.gmra.mrb[12].mxu1 %vm1495_vm3, %v1609_v60  ;;  %v2188_v20 = vpop.permute.xlu1 %2187 }
 0x577   : > { %3564 = vmatmul.mubr.msk.bf16.vlgmr.msra.gmra.mrb[8].mxu0 %vm1495_vm3, %v1835_v11  ;;  %3545 = vmatprep.mubr.msk.bf16.mxu1 %vm3892_vm2, %v3890_v28 }
 0x578   : > { %3574 = vmatpush3.bf16.xpose.msra.mxu0 %v1969_v12  ;;  %3575 = vmatprep.mubr.msk.bf16.mxu0 %vm3892_vm2, %v3890_v28 }
 0x579   : > { %3585 = vmatprep.subr.bf16.mxu0 %v3890_v28 }
 0x57a   : > { %v2300_v22 = vpop.permute.xlu1 %2299 }
 0x57f   : > { %3576 = vmatmul.mubr.msk.bf16.vlgmr.msra.gmra.mrb[12].mxu0 %vm1495_vm3, %v1963_v58 }
 0x580   : > { %3586 = vmatpush3.bf16.xpose.msra.mxu0 %v2082_v14  ;;  %3587 = vmatprep.mubr.msk.bf16.mxu0 %vm3892_vm2, %v3890_v28 }
 0x581   : > { %3597 = vmatprep.subr.bf16.mxu0 %v3890_v28 }
 0x587   : > { %3588 = vmatmul.mubr.msk.bf16.vlgmr.msra.gmra.mrb[16].mxu0 %vm1495_vm3, %v2074_v16 }
 0x588   : > { %3598 = vmatpush3.bf16.xpose.msra.mxu0 %v2195_v17  ;;  %3599 = vmatprep.mubr.msk.bf16.mxu0 %vm3892_vm2, %v3890_v28 }
 0x589   : > { %3609 = vmatprep.subr.bf16.mxu0 %v3890_v28 }
 0x58f   : > { %3600 = vmatmul.mubr.msk.bf16.vlgmr.msra.gmra.mrb[20].mxu0 %vm1495_vm3, %v2188_v20 }
 0x590   : > { %3610 = vmatpush3.bf16.xpose.msra.mxu0 %v2307_v21  ;;  %3611 = vmatprep.mubr.msk.bf16.mxu0 %vm3892_vm2, %v3890_v28 }
 0x591   : > { %3621 = vmatprep.subr.bf16.mxu0 %v3890_v28 }
 0x597   : > { %3612 = vmatmul.mubr.msk.bf16.vlgmr.msra.gmra.mrb[24].mxu0 %vm1495_vm3, %v2300_v22 }
 0x598   : > { %3637 = vmatprep.mubr.msk.bf16.mxu0 %vm3892_vm2, %v3890_v28 }
 0x641   : > { %v4356_v23 = vpop.f32.mrb[8].mxu1 }
 0x642   : > { %v3535_v24 = vpop.f32.mrb[9].mxu1  ;;  %v1766_v25 = vpop.f32.mrb[4].mxu0 }
 0x643   : > { %v1772_v26 = vmul.f32 0.17677669, %v1766_v25  ;;  %v1604_v27 = vpop.f32.mrb[10].mxu1  ;;  %v3553_v29 = vpop.f32.mrb[5].mxu0 }
 0x644   : > { %v3536_v30 = vpop.f32.mrb[11].mxu1  ;;  %v1769_v31 = vpop.f32.mrb[6].mxu0 }
 0x645   : > { %v3554_v33 = vpop.f32.mrb[7].mxu0  ;;  %v1773_v34 = vsel %vm1492_vm5, %v1772_v26, -1e+30 }
 0x646   : > { %v1774_v35 = vsel %vm1546_vm6, %v1773_v34, -inf }
 0x647   : > { %1775 = vmax.xlane.f32.xlu1 %v1774_v35 }
 0x649   : > { %v1653_v36 = vpop.f32.mrb[12].mxu1 }
 0x64a   : > { %v1659_v37 = vmul.f32 0.17677669, %v1653_v36  ;;  %v3541_v38 = vpop.f32.mrb[13].mxu1  ;;  %v1878_v39 = vpop.f32.mrb[8].mxu0 }
 0x64b   : > { %v1884_v41 = vmul.f32 0.17677669, %v1878_v39  ;;  %v1656_v42 = vpop.f32.mrb[14].mxu1  ;;  %v3565_v44 = vpop.f32.mrb[9].mxu0 }
 0x64c   : > { %v3542_v45 = vpop.f32.mrb[15].mxu1  ;;  %v1881_v46 = vpop.f32.mrb[10].mxu0  ;;  %v1660_v47 = vsel %vm1492_vm5, %v1659_v37, -1e+30 }
 0x64d   : > { %v3566_v48 = vpop.f32.mrb[11].mxu0  ;;  %v1661_v49 = vsel %vm1546_vm6, %v1660_v47, -inf  ;;  %v1885_v50 = vsel %vm1492_vm5, %v1884_v41, -1e+30 }
 0x64e   : > { %1662 = vmax.xlane.f32.xlu0 %v1661_v49  ;;  %v1886_v51 = vsel %vm1546_vm6, %v1885_v50, -inf }
 0x652   : > { %v2005_v52 = vpop.f32.mrb[12].mxu0  ;;  %1887 = vmax.xlane.f32.xlu0 %v1886_v51 }
 0x653   : > { %v2011_v53 = vmul.f32 0.17677669, %v2005_v52  ;;  %v3577_v55 = vpop.f32.mrb[13].mxu0 }
 0x654   : > { %v2008_v56 = vpop.f32.mrb[14].mxu0 }
 0x655   : > { %v3578_v57 = vpop.f32.mrb[15].mxu0  ;;  %v2012_v58 = vsel %vm1492_vm5, %v2011_v53, -1e+30 }
 0x656   : > { %v2013_v59 = vsel %vm1546_vm6, %v2012_v58, -inf }
 0x657   : > { %2014 = vmax.xlane.f32.xlu0 %v2013_v59 }
 0x65a   : > { %v2118_v60 = vpop.f32.mrb[16].mxu0 }
 0x65b   : > { %v2124_v61 = vmul.f32 0.17677669, %v2118_v60  ;;  %v3589_v62 = vpop.f32.mrb[17].mxu0 }
 0x65c   : > { %v2121_v63 = vpop.f32.mrb[18].mxu0 }
 0x65d   : > { %v3590_v0 = vpop.f32.mrb[19].mxu0  ;;  %v2125_v1 = vsel %vm1492_vm5, %v2124_v61, -1e+30 }
 0x65e   : > { %v2126_v2 = vsel %vm1546_vm6, %v2125_v1, -inf }
 0x65f   : > { %2127 = vmax.xlane.f32.xlu0 %v2126_v2 }
 0x662   : > { %v2231_v6 = vpop.f32.mrb[20].mxu0 }
 0x663   : > { %v2237_v7 = vmul.f32 0.17677669, %v2231_v6  ;;  %v3601_v8 = vpop.f32.mrb[21].mxu0 }
 0x664   : > { %v2234_v10 = vpop.f32.mrb[22].mxu0 }
 0x665   : > { %v3602_v11 = vpop.f32.mrb[23].mxu0  ;;  %v2238_v12 = vsel %vm1492_vm5, %v2237_v7, -1e+30 }
 0x666   : > { %v2239_v13 = vsel %vm1546_vm6, %v2238_v12, -inf }
 0x667   : > { %2240 = vmax.xlane.f32.xlu1 %v2239_v13 }
 0x66a   : > { %v2343_v14 = vpop.f32.mrb[24].mxu0 }
 0x66b   : > { %v2349_v15 = vmul.f32 0.17677669, %v2343_v14  ;;  %v3613_v16 = vpop.f32.mrb[25].mxu0 }
 0x66c   : > { %v2346_v17 = vpop.f32.mrb[26].mxu0 }
 0x66d   : > { %v3614_v18 = vpop.f32.mrb[27].mxu0  ;;  %v2350_v20 = vsel %vm1492_vm5, %v2349_v15, -1e+30 }
 0x66e   : > { %v2351_v21 = vsel %vm1546_vm6, %v2350_v20, -inf }
 0x66f   : > { %2352 = vmax.xlane.f32.xlu0 %v2351_v21 }
 0x6d4   : > { %v1776_v22 = vpop.xlane.xlu1 %1775 }
 0x6d5   : > { %v1777_v24 = vsub.f32 %v1773_v34, %v1776_v22 }
 0x6d7   : > { %v1778_v25 = vmul.f32 1.442695, %v1777_v24 }
 0x6d9   : > { %3830 = vpow2.f32 %v1778_v25 }
 0x6db   : > { %v1663_v26 = vpop.xlane.xlu0 %1662 }
 0x6dc   : > { %v1664_v27 = vsub.f32 %v1660_v47, %v1663_v26 }
 0x6de   : > { %v1665_v31 = vmul.f32 1.442695, %v1664_v27 }
 0x6df   : > { %v1888_v29 = vpop.xlane.xlu0 %1887 }
 0x6e0   : > { %v1889_v30 = vsub.f32 %v1885_v50, %v1888_v29 }
 0x6e2   : > { %v1890_v33 = vmul.f32 1.442695, %v1889_v30 }
 0x6e3   : > { %v4379_v35 = vpop.eup %3830 }
 0x6e4   : > { %3832 = vpow2.f32 %v1890_v33  ;;  %v2015_v36 = vpop.xlane.xlu0 %2014  ;;  %v1780_v43 = vsel %vm1546_vm6, %v4379_v35, 0.0 }
 0x6e5   : > { %v2016_v37 = vsub.f32 %v2012_v58, %v2015_v36  ;;  %1781 = vadd.xlane.f32.xlu0 %v1780_v43  ;;  %3834 = vpow2.f32 %v1665_v31 }
 0x6e7   : > { %v2017_v38 = vmul.f32 1.442695, %v2016_v37 }
 0x6e9   : > { %3836 = vpow2.f32 %v2017_v38 }
 0x6ec   : > { %v2128_v34 = vpop.xlane.xlu0 %2127 }
 0x6ed   : > { %v2129_v39 = vsub.f32 %v2125_v1, %v2128_v34 }
 0x6ee   : > { %v4383_v41 = vpop.eup %3832 }
 0x6ef   : > { %v2130_v42 = vmul.f32 1.442695, %v2129_v39  ;;  %v1892_v44 = vsel %vm1546_vm6, %v4383_v41, 0.0  ;;  %v3835_v45 = vpop.eup %3834 }
 0x6f0   : > { %1893 = vadd.xlane.f32.xlu1 %v1892_v44  ;;  %v1667_v47 = vsel %vm1546_vm6, %v3835_v45, 0.0 }
 0x6f1   : > { %3838 = vpow2.f32 %v2130_v42 }
 0x6f3   : > { %v4387_v46 = vpop.eup %3836 }
 0x6f4   : > { %1668 = vadd.xlane.f32.xlu1 %v1667_v47  ;;  %v2019_v48 = vsel %vm1546_vm6, %v4387_v46, 0.0  ;;  %v2241_v51 = vpop.xlane.xlu1 %2240  ;;  %v3774_v47 = vld [vmem:[%s4019_s13] sm:$0xff]  }
 0x6f5   : > { %2020 = vadd.xlane.f32.xlu0 %v2019_v48  ;;  %v2242_v52 = vsub.f32 %v2238_v12, %v2241_v51  ;;  %3622 = vmatpush3.bf16.msra.mxu0 %v3774_v47  ;;  %v3775_v48 = vld [vmem:[%s4019_s13 + $0x8] sm:$0xff]  }
 0x6f6   : > { %3623 = vmatprep.subr.bf16.mxu0 %v3890_v28 }
 0x6f7   : > { %v2243_v53 = vmul.f32 1.442695, %v2242_v52 }
 0x6f9   : > { %3840 = vpow2.f32 %v2243_v53  ;;  %3624 = vmatpush3.bf16.msra.mxu0 %v3775_v48  ;;  %v3870_v48 = vld [vmem:[#allocation2] sm:$0xff] }
 0x6fa   : > { %3625 = vmatprep.subr.bf16.mxu0 %v3890_v28 }
 0x6fb   : > { %v4392_v49 = vpop.eup %3838 }
 0x6fc   : > { %v2132_v50 = vsel %vm1546_vm6, %v4392_v49, 0.0  ;;  %v2353_v55 = vpop.xlane.xlu0 %2352 }
 0x6fd   : > { %2133 = vadd.xlane.f32.xlu0 %v2132_v50  ;;  %v2354_v56 = vsub.f32 %v2350_v20, %v2353_v55 }
 0x6ff   : > { %v2355_v57 = vmul.f32 1.442695, %v2354_v56 }
 0x701   : > { %3842 = vpow2.f32 %v2355_v57 }
 0x703   : > { %v4402_v58 = vpop.eup %3840 }
 0x704   : > { %v2245_v59 = vsel %vm1546_vm6, %v4402_v58, 0.0 }
 0x705   : > { %1674 = vrot.lane.b32.xlu1 %v4291_v40, %s3893_s21 }
 0x70b   : > { %v4406_v60 = vpop.eup %3842 }
 0x70c   : > { %v2357_v61 = vsel %vm1546_vm6, %v4406_v60, 0.0 }
 0x713   : > { %1786 = vrot.lane.b32.xlu0 %v4291_v40, %s3895_s17 }
 0x717   : > { %1898 = vrot.lane.b32.xlu0 %v4291_v40, %s3894_s28  ;;  %v2025_v40 = vpack.c.bf16 %v4287_v32, %v4287_v32 }
 0x719   : > { %v2030_v24 = vsel %vm1563_vm4, %v2025_v40, 0 }
 0x729   : > { %2246 = vadd.xlane.f32.xlu1 %v2245_v59 }
 0x736   : > { %2358 = vadd.xlane.f32.xlu0 %v2357_v61 }
 0x73a   : > { %2139 = vrot.lane.b32.xlu1 %v2025_v40, %s3893_s21 }
 0x73e   : > { %2363 = vrot.lane.b32.xlu1 %v2025_v40, %s3894_s28 }
 0x74c   : > { %2251 = vrot.lane.b32.xlu0 %v2025_v40, %s3895_s17 }
 0x772   : > { %v1782_v0 = vpop.xlane.xlu0 %1781 }
 0x77d   : > { %v1894_v62 = vpop.xlane.xlu1 %1893 }
 0x781   : > { %v1669_v63 = vpop.xlane.xlu1 %1668 }
 0x782   : > { %3844 = vrcp.f32 %v1669_v63  ;;  %v2021_v2 = vpop.xlane.xlu0 %2020 }
 0x783   : > { %3846 = vrcp.f32 %v1782_v0  ;;  %v3776_v0 = vld [vmem:[%s4019_s13 + $0x10] sm:$0xff]  }
 0x784   : > { %3848 = vrcp.f32 %v1894_v62  ;;  %3626 = vmatpush3.bf16.msra.mxu0 %v3776_v0 }
 0x785   : > { %v1675_v1 = vpop.permute.xlu1 %1674  ;;  %3850 = vrcp.f32 %v2021_v2  ;;  %3627 = vmatprep.subr.bf16.mxu0 %v3890_v28  ;;  %v3778_v2 = vld [vmem:[%s4019_s13 + $0x20] sm:$0xff]  }
 0x786   : > { %v1680_v6 = vsel %vm1563_vm4, %v1675_v1, 0  ;;  %v3777_v1 = vld [vmem:[%s4019_s13 + $0x18] sm:$0xff]  }
 0x787   : > { %3544 = vmatpush3.bf16.msra.mxu1 %v1680_v6 }
 0x788   : > { %3555 = vmatprep.subr.bf16.mxu1 %v3890_v28  ;;  %3628 = vmatpush3.bf16.msra.mxu0 %v3777_v1  ;;  %v3790_v1 = vld [vmem:[%s4029_s25 + $0x24] ss:$8 sps:$4 sm:$0xff]  }
 0x789   : > { %3629 = vmatprep.subr.bf16.mxu0 %v3890_v28 }
 0x78a   : > { %v2134_v7 = vpop.xlane.xlu0 %2133 }
 0x78b   : > { %3852 = vrcp.f32 %v2134_v7 }
 0x78c   : > { %v3845_v32 = vpop.eup %3844  ;;  %3630 = vmatpush3.bf16.msra.mxu0 %v3778_v2  ;;  %v3788_v2 = vld [vmem:[%s4029_s25 + $0x20] ss:$8 sps:$4 sm:$0xff]  }
 0x78d   : > { %v1671_v8 = vmul.f32 %v3845_v32, %v3835_v45  ;;  %v3847_v13 = vpop.eup %3846  ;;  %3631 = vmatprep.subr.bf16.mxu0 %v3890_v28 }
 0x78e   : > { %v1787_v10 = vpop.permute.xlu0 %1786  ;;  %v1784_v14 = vmul.f32 %v3847_v13, %v4379_v35  ;;  %v3849_v17 = vpop.eup %3848  ;;  %v3781_v13 = vld [vmem:[%s4019_s13 + $0x38] sm:$0xff]  }
 0x78f   : > { %v1792_v11 = vsel %vm1563_vm4, %v1787_v10, 0  ;;  %v1672_v12 = vpack.c.bf16 %v1671_v8, %v1671_v8  ;;  %v1896_v20 = vmul.f32 %v3849_v17, %v4383_v41  ;;  %v3851_v22 = vpop.eup %3850 }
 0x790   : > { %v1785_v16 = vpack.c.bf16 %v1784_v14, %v1784_v14  ;;  %v2023_v25 = vmul.f32 %v3851_v22, %v4387_v46 }
 0x791   : > { %3546 = vmatmul.mubr.msk.bf16.vlgmr.msra.gmra.mrb[16].mxu1 %vm1546_vm6, %v1672_v12  ;;  %v1897_v21 = vpack.c.bf16 %v1896_v20, %v1896_v20  ;;  %v3780_v12 = vld [vmem:[%s4019_s13 + $0x30] sm:$0xff]  }
 0x792   : > { %3556 = vmatpush3.bf16.msra.mxu1 %v1792_v11  ;;  %3557 = vmatprep.mubr.msk.bf16.mxu1 %vm3892_vm2, %v3890_v28  ;;  %v1899_v15 = vpop.permute.xlu0 %1898  ;;  %v2024_v26 = vpack.c.bf16 %v2023_v25, %v2023_v25  ;;  %v3779_v11 = vld [vmem:[%s4019_s13 + $0x28] sm:$0xff]  }
 0x793   : > { %3567 = vmatprep.subr.bf16.mxu1 %v3890_v28  ;;  %v1904_v18 = vsel %vm1563_vm4, %v1899_v15, 0  ;;  %3632 = vmatpush3.bf16.msra.mxu0 %v3779_v11  ;;  %v3797_v11 = vld [vmem:[%s4029_s25 + $0x50] ss:$8 sps:$4 sm:$0xff]  }
 0x794   : > { %3633 = vmatprep.subr.bf16.mxu0 %v3890_v28 }
 0x795   : > { %v3853_v27 = vpop.eup %3852 }
 0x796   : > { %v2136_v30 = vmul.f32 %v3853_v27, %v4392_v49 }
 0x797   : > { %3634 = vmatpush3.bf16.msra.mxu0 %v3780_v12  ;;  %v3802_v12 = vld [vmem:[%s4029_s25 + $0x64] ss:$8 sps:$4 sm:$0xff]  }
 0x798   : > { %v2137_v35 = vpack.c.bf16 %v2136_v30, %v2136_v30  ;;  %3635 = vmatprep.subr.bf16.mxu0 %v3890_v28 }
 0x799   : > { %3558 = vmatmul.mubr.msk.bf16.vlgmr.msra.gmra.mrb[20].mxu1 %vm1546_vm6, %v1785_v16 }
 0x79a   : > { %3568 = vmatpush3.bf16.msra.mxu1 %v1904_v18  ;;  %3569 = vmatprep.mubr.msk.bf16.mxu1 %vm3892_vm2, %v3890_v28 }
 0x79b   : > { %3579 = vmatprep.subr.bf16.mxu1 %v3890_v28  ;;  %3636 = vmatpush3.bf16.msra.mxu0 %v3781_v13  ;;  %v3800_v13 = vld [vmem:[%s4029_s25 + $0x60] ss:$8 sps:$4 sm:$0xff]  }
 0x7a1   : > { %3570 = vmatmul.mubr.msk.bf16.vlgmr.msra.gmra.mrb[24].mxu1 %vm1546_vm6, %v1897_v21 }
 0x7a2   : > { %3580 = vmatpush3.bf16.msra.mxu1 %v2030_v24  ;;  %3581 = vmatprep.mubr.msk.bf16.mxu1 %vm3892_vm2, %v3890_v28 }
 0x7a3   : > { %3591 = vmatprep.subr.bf16.mxu1 %v3890_v28 }
 0x7a9   : > { %3582 = vmatmul.mubr.msk.bf16.vlgmr.msra.gmra.mrb[28].mxu1 %vm1546_vm6, %v2024_v26 }
 0x7aa   : > { %3593 = vmatprep.mubr.msk.bf16.mxu1 %vm3892_vm2, %v3890_v28 }
 0x7b6   : > { %v2247_v29 = vpop.xlane.xlu1 %2246 }
 0x7b7   : > { %3854 = vrcp.f32 %v2247_v29 }
 0x7ba   : > { %v2140_v31 = vpop.permute.xlu1 %2139 }
 0x7bb   : > { %v2145_v33 = vsel %vm1563_vm4, %v2140_v31, 0 }
 0x7bc   : > { %3592 = vmatpush3.bf16.msra.mxu1 %v2145_v33 }
 0x7bd   : > { %3603 = vmatprep.subr.bf16.mxu1 %v3890_v28 }
 0x7be   : > { %v2364_v39 = vpop.permute.xlu1 %2363 }
 0x7bf   : > { %3594 = vmatmul.mubr.msk.bf16.vlgmr.msra.gmra.mrb[32].mxu1 %vm1546_vm6, %v2137_v35  ;;  %v2369_v42 = vsel %vm1563_vm4, %v2364_v39, 0 }
 0x7c0   : > { %3605 = vmatprep.mubr.msk.bf16.mxu1 %vm3892_vm2, %v3890_v28 }
 0x7c1   : > { %v3855_v36 = vpop.eup %3854 }
 0x7c2   : > { %v2249_v37 = vmul.f32 %v3855_v36, %v4402_v58 }
 0x7c3   : > { %v2359_v43 = vpop.xlane.xlu0 %2358 }
 0x7c4   : > { %3856 = vrcp.f32 %v2359_v43  ;;  %v2250_v41 = vpack.c.bf16 %v2249_v37, %v2249_v37 }
 0x7c7   : > { %v2252_v38 = vpop.permute.xlu0 %2251 }
 0x7c8   : > { %v2257_v34 = vsel %vm1563_vm4, %v2252_v38, 0 }
 0x7c9   : > { %3604 = vmatpush3.bf16.msra.mxu1 %v2257_v34 }
 0x7ca   : > { %3615 = vmatprep.subr.bf16.mxu1 %v3890_v28 }
 0x7cc   : > { %3606 = vmatmul.mubr.msk.bf16.vlgmr.msra.gmra.mrb[36].mxu1 %vm1546_vm6, %v2250_v41 }
 0x7cd   : > { %3616 = vmatpush3.bf16.msra.mxu1 %v2369_v42  ;;  %3617 = vmatprep.mubr.msk.bf16.mxu1 %vm3892_vm2, %v3890_v28 }
 0x7ce   : > { %v3857_v44 = vpop.eup %3856 }
 0x7cf   : > { %v2361_v45 = vmul.f32 %v3857_v44, %v4406_v60  ;;  %v3299_v44 = vld [vmem:[%s4610_s15] ss:$0 sm:$0xff] }
 0x7d1   : > { %v2362_v46 = vpack.c.bf16 %v2361_v45, %v2361_v45 }
 0x7d4   : > { %3618 = vmatmul.mubr.msk.bf16.vlgmr.msra.gmra.mrb[40].mxu1 %vm1546_vm6, %v2362_v46 }
 0x7d5   : > { %2716 = vmatprep.mubr.bf16.mxu1 %v3891_v54 }
 0x864   : > { %v1716_v49 = vpop.f32.mrb[16].mxu1 }
 0x865   : > { %v3547_v50 = vpop.f32.mrb[17].mxu1 }
 0x866   : > { %v1719_v51 = vpop.f32.mrb[18].mxu1 }
 0x867   : > { %v3548_v52 = vpop.f32.mrb[19].mxu1 }
 0x868   : > { %v3871_v52 = vld [vmem:[#allocation2 + $0x8] sm:$0xff] }
 0x86c   : > { %v1828_v53 = vpop.f32.mrb[20].mxu1 }
 0x86d   : > { %v3559_v55 = vpop.f32.mrb[21].mxu1 }
 0x86e   : > { %v1831_v56 = vpop.f32.mrb[22].mxu1  ;;  %v3782_v55 = vld [vmem:[%s4029_s25] ss:$8 sps:$4 sm:$0xff]  }
 0x86f   : > { %v3560_v57 = vpop.f32.mrb[23].mxu1  ;;  %v3784_v56 = vld [vmem:[%s4029_s25 + $0x4] ss:$8 sps:$4 sm:$0xff]  }
 0x870   : > { %v3787_v57 = vld [vmem:[%s4029_s25 + $0x14] ss:$8 sps:$4 sm:$0xff]   ;;  %2684 = vmatprep.subr.bf16.mxu1 %v3784_v56 }
 0x871   : > { %2685 = vmatpush1.bf16.msra.mxu1 %v3782_v55 }
 0x872   : > { %2686 = vmatprep.subr.bf16.mxu1 %v3787_v57 }
 0x874   : > { %v1940_v54 = vpop.f32.mrb[24].mxu1 }
 0x875   : > { %v3571_v58 = vpop.f32.mrb[25].mxu1 }
 0x876   : > { %v1943_v59 = vpop.f32.mrb[26].mxu1 }
 0x877   : > { %v3572_v60 = vpop.f32.mrb[27].mxu1 }
 0x87c   : > { %v2066_v61 = vpop.f32.mrb[28].mxu1 }
 0x87d   : > { %v3583_v40 = vpop.f32.mrb[29].mxu1 }
 0x87e   : > { %v2069_v62 = vpop.f32.mrb[30].mxu1 }
 0x87f   : > { %v3584_v63 = vpop.f32.mrb[31].mxu1 }
 0x892   : > { %v2181_v6 = vpop.f32.mrb[32].mxu1 }
 0x893   : > { %v3727_v7 = vpack.i.bf16 %v2181_v6, %v1716_v49  ;;  %v3595_v32 = vpop.f32.mrb[33].mxu1  ;;  %v3793_v6 = vld [vmem:[%s4029_s25 + $0x34] ss:$8 sps:$4 sm:$0xff]  }
 0x894   : > { %v2184_v8 = vpop.f32.mrb[34].mxu1  ;;  %v3796_v32 = vld [vmem:[%s4029_s25 + $0x44] ss:$8 sps:$4 sm:$0xff]  }
 0x895   : > { %3728 = vrot.lane.b32.xlu1 %v3727_v7, %s3894_s28  ;;  %v3596_v10 = vpop.f32.mrb[35].mxu1  ;;  %v3791_v7 = vld [vmem:[%s4029_s25 + $0x30] ss:$8 sps:$4 sm:$0xff]   ;;  %v3794_v8 = vld [vmem:[%s4029_s25 + $0x40] ss:$8 sps:$4 sm:$0xff]  }
 0x896   : > { %v3799_v10 = vld [vmem:[%s4029_s25 + $0x54] ss:$8 sps:$4 sm:$0xff]  }
 0x89f   : > { %v2293_v14 = vpop.f32.mrb[36].mxu1 }
 0x8a0   : > { %v3732_v15 = vpack.i.bf16 %v2293_v14, %v1828_v53  ;;  %v3607_v16 = vpop.f32.mrb[37].mxu1  ;;  %v3805_v14 = vld [vmem:[%s4029_s25 + $0x74] ss:$8 sps:$4 sm:$0xff]  }
 0x8a1   : > { %v2296_v17 = vpop.f32.mrb[38].mxu1  ;;  %v3806_v16 = vld [vmem:[%s4040_s16 + $0x40] sm:$0xff]  }
 0x8a2   : > { %3733 = vrot.lane.b32.xlu1 %v3732_v15, %s3895_s17  ;;  %v3608_v18 = vpop.f32.mrb[39].mxu1  ;;  %v3803_v15 = vld [vmem:[%s4029_s25 + $0x70] ss:$8 sps:$4 sm:$0xff]   ;;  %v3807_v17 = vld [vmem:[%s4040_s16] sm:$0xff]   ;;  %3474 = vmatprep.subr.bf16.mxu0 %v3806_v16 }
 0x8a3   : > { %v3808_v18 = vld [vmem:[%s4040_s16 + $0x48] sm:$0xff]  }
 0x8a7   : > { %v2405_v20 = vpop.f32.mrb[40].mxu1 }
 0x8a8   : > { %v3737_v21 = vpack.i.bf16 %v2405_v20, %v1940_v54  ;;  %v3619_v22 = vpop.f32.mrb[41].mxu1  ;;  %v3785_v54 = vld [vmem:[%s4029_s25 + $0x10] ss:$8 sps:$4 sm:$0xff]   ;;  %v3809_v20 = vld [vmem:[%s4040_s16 + $0x8] sm:$0xff]  }
 0x8a9   : > { %v2408_v24 = vpop.f32.mrb[42].mxu1  ;;  %2687 = vmatpush1.bf16.msra.mxu1 %v3785_v54 }
 0x8aa   : > { %3738 = vrot.lane.b32.xlu1 %v3737_v21, %s3893_s21  ;;  %v3620_v25 = vpop.f32.mrb[43].mxu1  ;;  %2688 = vmatprep.subr.bf16.mxu1 %v3790_v1 }
 0x8ad   : > { %2689 = vmatpush1.bf16.msra.mxu1 %v3788_v2 }
 0x8ae   : > { %2690 = vmatprep.subr.bf16.mxu1 %v3793_v6 }
 0x8b1   : > { %2691 = vmatpush1.bf16.msra.mxu1 %v3791_v7 }
 0x8b2   : > { %2692 = vmatprep.subr.bf16.mxu1 %v3796_v32 }
 0x8b5   : > { %2693 = vmatpush1.bf16.msra.mxu1 %v3794_v8 }
 0x8b6   : > { %2694 = vmatprep.subr.bf16.mxu1 %v3799_v10 }
 0x8b9   : > { %2695 = vmatpush1.bf16.msra.mxu1 %v3797_v11 }
 0x8ba   : > { %2696 = vmatprep.subr.bf16.mxu1 %v3802_v12 }
 0x8bd   : > { %2697 = vmatpush1.bf16.msra.mxu1 %v3800_v13 }
 0x8be   : > { %2698 = vmatprep.subr.bf16.mxu1 %v3805_v14 }
 0x8c1   : > { %2699 = vmatpush1.bf16.msra.mxu1 %v3803_v15 }
 0x907   : > { %v3729_v26 = vpop.permute.xlu1 %3728 }
 0x908   : > { %v3731_v29 = vunpack.i.h.bf16 %v3729_v26  ;;  %v3730_v28 = vunpack.i.l.bf16 %v3729_v26 }
 0x90a   : > { %v2423_v35 = vsel %vm1495_vm3, %v2066_v61, %v3731_v29  ;;  %v1958_v36 = vsel %vm1495_vm3, %v4356_v23, %v3730_v28  ;;  %v2566_v28 = vrot.slane %v4266_v5, %v1273_v19  ;;  %v3810_v19 = vld [vmem:[%s4040_s16 + $0x50] sm:$0xff]  }
 0x914   : > { %v3734_v27 = vpop.permute.xlu1 %3733 }
 0x915   : > { %v3736_v30 = vunpack.i.h.bf16 %v3734_v27  ;;  %v3735_v31 = vunpack.i.l.bf16 %v3734_v27 }
 0x917   : > { %v2424_v38 = vsel %vm1959_vm7, %v2423_v35, %v3736_v30  ;;  %v1960_v34 = vsel %vm1959_vm7, %v1958_v36, %v3735_v31  ;;  %v2571_v31 = vsub.s32 3, %v4260_v3  ;;  %v3812_v3 = vld [vmem:[%s4040_s16 + $0x58] sm:$0xff]  }
 0x91c   : > { %v3739_v33 = vpop.permute.xlu1 %3738 }
 0x91d   : > { %v3741_v43 = vunpack.i.h.bf16 %v3739_v33  ;;  %v3740_v37 = vunpack.i.l.bf16 %v3739_v33 }
 0x91f   : > { %v2425_v39 = vsel %vm1961_vm8, %v2424_v38, %v3741_v43  ;;  %v1962_v41 = vsel %vm1961_vm8, %v1960_v34, %v3740_v37  ;;  %v2572_v43 = vrot.slane %v4266_v5, %v2571_v31  ;;  %v3814_v5 = vld [vmem:[%s4040_s16 + $0x60] sm:$0xff]  }
 0x920   : > { %v2443_v42 = vpack.c.bf16 %v2425_v39, %v1962_v41  ;;  %v3811_v41 = vld [vmem:[%s4040_s16 + $0x10] sm:$0xff]  }
 0x922   : > { %3638 = vmatmul.mubr.bf16.vlgmr.msra.gmra.mrb[28].mxu0 %v2443_v42  ;;  %v3813_v42 = vld [vmem:[%s4040_s16 + $0x18] sm:$0xff]  }
 0x923   : > { %3475 = vmatpush3.bf16.msra.mxu0 %v3807_v17 }
 0x924   : > { %3476 = vmatprep.subr.bf16.mxu0 %v3808_v18 }
 0x927   : > { %3477 = vmatpush3.bf16.msra.mxu0 %v3809_v20 }
 0x928   : > { %3478 = vmatprep.subr.bf16.mxu0 %v3810_v19 }
 0x92b   : > { %3479 = vmatpush3.bf16.msra.mxu0 %v3811_v41 }
 0x92c   : > { %3480 = vmatprep.subr.bf16.mxu0 %v3812_v3 }
 0x92f   : > { %3481 = vmatpush3.bf16.msra.mxu0 %v3813_v42 }
 0x930   : > { %3482 = vmatprep.subr.bf16.mxu0 %v3814_v5 }
 0x9f5   : > { %v2532_v45 = vpop.f32.mrb[28].mxu0 }
 0x9f6   : > { %v2533_v46 = vadd.f32 %v3299_v44, %v2532_v45  ;;  %v3639_v23 = vpop.f32.mrb[29].mxu0  ;;  %v3816_v45 = vld [vmem:[%s4040_s16 + $0x68] sm:$0xff]  }
 0x9f7   : > { %v2535_v47 = vpop.f32.mrb[30].mxu0  ;;  %v3818_v23 = vld [vmem:[%s4040_s16 + $0x70] sm:$0xff]  }
 0x9f8   : > { %v4480_v49 = vadd.f32 %v3870_v48, %v2533_v46  ;;  %v2536_v50 = vadd.f32 %v3299_v44, %v2535_v47  ;;  %v3640_v51 = vpop.f32.mrb[31].mxu0  ;;  %v3815_v44 = vld [vmem:[%s4040_s16 + $0x20] sm:$0xff]   ;;  %v3817_v46 = vld [vmem:[%s4040_s16 + $0x28] sm:$0xff]   ;;  %v3819_v47 = vld [vmem:[%s4040_s16 + $0x30] sm:$0xff]  }
 0x9f9   : > { %3483 = vmatpush3.bf16.msra.mxu0 %v3815_v44  ;;  %v3820_v48 = vld [vmem:[%s4040_s16 + $0x78] sm:$0xff]   ;;  %v2591_v51 = vld [vmem:[%s4035_s29] sm:$0x3]  ;;  %s4612_s29 = sld [smem:[#allocation7_spill]] (!%p3341_p5) }
 0x9fa   : > { %v4482_v53 = vadd.f32 %v3871_v52, %v2536_v50  ;;  %2541 = vadd.xlane.f32.xlu1 %v4480_v49  ;;  %3484 = vmatprep.subr.bf16.mxu0 %v3816_v45  ;;  %v3821_v50 = vld [vmem:[%s4040_s16 + $0x38] sm:$0xff]   ;;  %v2597_v52 = vrot.slane %v2591_v51, %v4263_v4  ;;  %v2601_v55 = vrot.slane %v2591_v51, %v4272_v9 }
 0x9fc   : > { %2543 = vadd.xlane.f32.xlu0 %v4482_v53 }
 0x9fd   : > { %3485 = vmatpush3.bf16.msra.mxu0 %v3817_v46 }
 0x9fe   : > { %3486 = vmatprep.subr.bf16.mxu0 %v3818_v23 }
 0xa01   : > { %3487 = vmatpush3.bf16.msra.mxu0 %v3819_v47 }
 0xa02   : > { %3488 = vmatprep.subr.bf16.mxu0 %v3820_v48 }
 0xa05   : > { %3489 = vmatpush3.bf16.msra.mxu0 %v3821_v50 }
 0xa87   : > { %v2542_v58 = vpop.xlane.xlu1 %2541 }
 0xa88   : > { %v2545_v59 = vmul.f32 0.0078125, %v2542_v58 }
 0xa89   : > { %v2544_v60 = vpop.xlane.xlu0 %2543 }
 0xa8a   : > { %v2547_v61 = vsub.f32 %v4480_v49, %v2545_v59  ;;  %v2546_v40 = vmul.f32 0.0078125, %v2544_v60 }
 0xa8c   : > { %v2548_v62 = vsub.f32 %v4482_v53, %v2546_v40  ;;  %v2549_v63 = vmul.f32 %v2547_v61, %v2547_v61 }
 0xa8e   : > { %2551 = vadd.xlane.f32.xlu0 %v2549_v63  ;;  %v2550_v0 = vmul.f32 %v2548_v62, %v2548_v62 }
 0xa92   : > { %2553 = vadd.xlane.f32.xlu0 %v2550_v0 }
 0xb1b   : > { %v2552_v21 = vpop.xlane.xlu0 %2551 }
 0xb1c   : > { %v2555_v22 = vmul.f32 0.0078125, %v2552_v21 }
 0xb1e   : > { %v2557_v24 = vadd.f32 1e-06, %v2555_v22 }
 0xb1f   : > { %v2554_v25 = vpop.xlane.xlu0 %2553 }
 0xb20   : > { %3858 = vrsqrt.f32 %v2557_v24  ;;  %v2556_v26 = vmul.f32 0.0078125, %v2554_v25  ;;  %v3324_v24 = vld [vmem:[%s645_s24] ss:$0 sm:$0xff]  ;;  %s4611_s24 = sld [smem:[#allocation8_spill]] (!%p3341_p5) }
 0xb22   : > { %v2558_v27 = vadd.f32 1e-06, %v2556_v26 }
 0xb24   : > { %3860 = vrsqrt.f32 %v2558_v27 }
 0xb26   : > { %v3874_v42 = vld [vmem:[%s4611_s24 + $0x10] sm:$0xff] (!%p3341_p5)   ;;  %v3875_v5 = vld [vmem:[%s4611_s24 + $0x18] sm:$0xff] (!%p3341_p5)   ;;  %v3876_v44 = vld [vmem:[%s4611_s24 + $0x20] sm:$0xff] (!%p3341_p5)  }
 0xb27   : > { %v3877_v45 = vld [vmem:[%s4611_s24 + $0x28] sm:$0xff] (!%p3341_p5)   ;;  %v3878_v46 = vld [vmem:[%s4611_s24 + $0x30] sm:$0xff] (!%p3341_p5)   ;;  %v3879_v23 = vld [vmem:[%s4611_s24 + $0x38] sm:$0xff] (!%p3341_p5)  }
 0xb2a   : > { %v3859_v29 = vpop.eup %3858 }
 0xb2b   : > { %v2561_v30 = vmul.f32 %v3859_v29, %v2547_v61 }
 0xb2d   : > { %v2567_v36 = vmul.f32 %v2566_v28, %v2561_v30 }
 0xb2e   : > { %v3861_v33 = vpop.eup %3860 }
 0xb2f   : > { %v2562_v35 = vmul.f32 %v3861_v33, %v2548_v62  ;;  %v2573_v38 = vadd.f32 %v2572_v43, %v2567_v36 }
 0xb31   : > { %v2568_v37 = vmul.f32 %v2566_v28, %v2562_v35 }
 0xb33   : > { %v2574_v34 = vadd.f32 %v2572_v43, %v2568_v37 }
 0xb35   : > { %v2592_v39 = vpack.c.bf16 %v2574_v34, %v2573_v38  ;;  %v3872_v38 = vld [vmem:[%s4611_s24] sm:$0xff] (!%p3341_p5)  }
 0xb37   : > { %2717 = vmatmul.mubr.bf16.vlgmr.msra.gmra.mrb[44].mxu1 %v2592_v39 }
 0xc0a   : > { %v2718_v56 = vpop.f32.mrb[44].mxu1 }
 0xc0b   : > { %v2719_v57 = vadd.f32 %v2718_v56, %v2597_v52  ;;  %v2720_v54 = vpop.f32.mrb[45].mxu1  ;;  %v3343_v56 = vld [vmem:[%s4612_s29 + $0x1] ss:$0 sm:$0xff] (!%p3341_p5) }
 0xc0c   : > { %v2721_v58 = vadd.f32 %v2720_v54, %v2601_v55  ;;  %v2722_v59 = vpop.f32.mrb[46].mxu1 }
 0xc0d   : > { %v2731_v60 = vmul.f32 0.70710677, %v2719_v57  ;;  %v2723_v61 = vadd.f32 %v2722_v59, %v2597_v52  ;;  %v2724_v40 = vpop.f32.mrb[47].mxu1  ;;  %v2727_v8 = vmul.f32 0.5, %v2719_v57  ;;  %v3342_v52 = vld [vmem:[%s4612_s29] ss:$0 sm:$0xff] (!%p3341_p5) }
 0xc0e   : > { %v2732_v62 = vmul.f32 0.70710677, %v2721_v58  ;;  %v2725_v63 = vadd.f32 %v2724_v40, %v2601_v55  ;;  %v2728_v12 = vmul.f32 0.5, %v2721_v58  ;;  %v3344_v59 = vld [vmem:[%s4613_s22] ss:$0 sm:$0xff] (!%p3341_p5) }
 0xc0f   : > { %3862 = verf.f32 %v2731_v60  ;;  %v2733_v0 = vmul.f32 0.70710677, %v2723_v61  ;;  %v2729_v10 = vmul.f32 0.5, %v2723_v61 }
 0xc10   : > { %3864 = verf.f32 %v2732_v62  ;;  %v2734_v1 = vmul.f32 0.70710677, %v2725_v63  ;;  %v2730_v13 = vmul.f32 0.5, %v2725_v63 }
 0xc11   : > { %3866 = verf.f32 %v2733_v0 }
 0xc12   : > { %3868 = verf.f32 %v2734_v1 }
 0xc19   : > { %v3863_v2 = vpop.eup %3862 }
 0xc1a   : > { %v3865_v4 = vpop.eup %3864  ;;  %v2739_v6 = vadd.f32 1.0, %v3863_v2 }
 0xc1b   : > { %v3867_v9 = vpop.eup %3866  ;;  %v2740_v7 = vadd.f32 1.0, %v3865_v4 }
 0xc1c   : > { %v3869_v32 = vpop.eup %3868  ;;  %v2741_v11 = vadd.f32 1.0, %v3867_v9  ;;  %v2743_v15 = vmul.f32 %v2739_v6, %v2727_v8 }
 0xc1d   : > { %v2742_v14 = vadd.f32 1.0, %v3869_v32  ;;  %v2744_v17 = vmul.f32 %v2740_v7, %v2728_v12 }
 0xc1e   : > { %v2745_v16 = vmul.f32 %v2741_v11, %v2729_v10 }
 0xc1f   : > { %v2746_v18 = vmul.f32 %v2742_v14, %v2730_v13 }
 0xc20   : > { %v2780_v20 = vpack.c.bf16 %v2745_v16, %v2743_v15 }
 0xc21   : > { %v2781_v21 = vpack.c.bf16 %v2746_v18, %v2744_v17 }
 0xc23   : > { %2916 = vmatprep.mubr.bf16.mxu0 %v2781_v21 }
 0xc24   : > { %2917 = vmatmul.mubr.bf16.vlgmr.msra.gmra.mrb[32].mxu0 %v2780_v20 }
 0xcf7   : > { %v3490_v22 = vpop.f32.mrb[32].mxu0 }
 0xcf8   : > { %v3491_v25 = vpop.f32.mrb[33].mxu0 }
 0xcf9   : > { %v3492_v26 = vadd.f32 %v3491_v25, %v3490_v22  ;;  %v3493_v27 = vpop.f32.mrb[34].mxu0 }
 0xcfa   : > { %v3494_v29 = vpop.f32.mrb[35].mxu0 }
 0xcfb   : > { %v2919_v28 = vadd.f32 %v3492_v26, %v3324_v24  ;;  %v3495_v30 = vadd.f32 %v3494_v29, %v3493_v27  ;;  %2932 = sbr.rel (%p3341_p5) target bundleno = 3863 (0xf17), region = 92 }
 0xcfd   : > { %v2925_v31 = vadd.f32 %v2919_v28, %v4480_v49  ;;  %v2922_v33 = vadd.f32 %v3495_v30, %v3324_v24  ;;  %v3896_v49 = vmov (!%p3341_p5), 0.0  }
 0xcfe   : > { %3641 = vmatprep.subr.bf16.mxu0 (!%p3341_p5), %v3896_v49  ;;  %3657 = vmatprep.mubr.msk.bf16.mxu0 (!%p3341_p5), %vm3897_vm11, %v3896_v49 }
 0xcff   : > { %2927 = vst [vmem:[#allocation2] sm:$0xff] %v2925_v31  ;;  %v2926_v35 = vadd.f32 %v2922_v33, %v4482_v53  ;;  %3642 = vmatpush3.bf16.msra.mxu0 (!%p3341_p5), %v3872_v38  ;;  %v3873_v53 = vld [vmem:[%s4611_s24 + $0x8] sm:$0xff] (!%p3341_p5)  }
 0xd00   : > { %3643 = vmatprep.subr.bf16.mxu0 (!%p3341_p5), %v3896_v49 }
 0xd01   : > { %2928 = vst [vmem:[#allocation2 + $0x8] sm:$0xff] %v2926_v35  ;;  %v2936_v36 = vrot.slane (!%p3341_p5), %v2926_v35, 7 }
 0xd03   : > { %v2939_v43 = vsel %vm2938_vm9, %v2925_v31, %v2936_v36  ;;  %3644 = vmatpush3.bf16.msra.mxu0 %v3873_v53 }
 0xd04   : > { %v2941_v37 = vsel %vm2940_vm10, %v2939_v43, 0.0  ;;  %3645 = vmatprep.subr.bf16.mxu0 %v3896_v49 }
 0xd05   : > { %2942 = vadd.xlane.f32.xlu0 %v2941_v37 }
 0xd07   : > { %3646 = vmatpush3.bf16.msra.mxu0 %v3874_v42 }
 0xd08   : > { %3647 = vmatprep.subr.bf16.mxu0 %v3896_v49 }
 0xd0b   : > { %3648 = vmatpush3.bf16.msra.mxu0 %v3875_v5 }
 0xd0c   : > { %3649 = vmatprep.subr.bf16.mxu0 %v3896_v49 }
 0xd0f   : > { %3650 = vmatpush3.bf16.msra.mxu0 %v3876_v44 }
 0xd10   : > { %3651 = vmatprep.subr.bf16.mxu0 %v3896_v49 }
 0xd13   : > { %3652 = vmatpush3.bf16.msra.mxu0 %v3877_v45 }
 0xd14   : > { %3653 = vmatprep.subr.bf16.mxu0 %v3896_v49 }
 0xd17   : > { %3654 = vmatpush3.bf16.msra.mxu0 %v3878_v46 }
 0xd18   : > { %3655 = vmatprep.subr.bf16.mxu0 %v3896_v49 }
 0xd1b   : > { %3656 = vmatpush3.bf16.msra.mxu0 %v3879_v23 }
 0xd92   : > { %v2943_v34 = vpop.xlane.xlu0 %2942 }
 0xd93   : > { %v2944_v39 = vmul.f32 0.0078125, %v2943_v34 }
 0xd95   : > { %v2945_v19 = vsub.f32 %v2939_v43, %v2944_v39 }
 0xd97   : > { %v2946_v41 = vmul.f32 %v2945_v19, %v2945_v19 }
 0xd99   : > { %v2947_v3 = vsel %vm2940_vm10, %v2946_v41, 0.0 }
 0xd9a   : > { %2948 = vadd.xlane.f32.xlu0 %v2947_v3 }
 0xe27   : > { %v2949_v47 = vpop.xlane.xlu0 %2948 }
 0xe28   : > { %v2950_v48 = vmul.f32 0.0078125, %v2949_v47 }
 0xe2a   : > { %v2951_v50 = vadd.f32 1e-06, %v2950_v48 }
 0xe2c   : > { %3880 = vrsqrt.f32 %v2951_v50 }
 0xe36   : > { %v3881_v51 = vpop.eup %3880 }
 0xe37   : > { %v2953_v55 = vmul.f32 %v3881_v51, %v2945_v19 }
 0xe39   : > { %v2958_v57 = vmul.f32 %v3342_v52, %v2953_v55 }
 0xe3b   : > { %v2963_v54 = vadd.f32 %v3343_v56, %v2958_v57 }
 0xe3d   : > { %v2981_v58 = vpack.c.bf16 %v2963_v54, %v2963_v54 }
 0xe3f   : > { %3658 = vmatmul.mubr.bf16.vlgmr.msra.gmra.mrb[0].mxu0 %v2981_v58 }
 0xf12   : > { %v3070_v60 = vpop.f32.mrb[0].mxu0 }
 0xf13   : > { %v3071_v61 = vadd.f32 %v3344_v59, %v3070_v60  ;;  %v3659_v40 = vpop.f32.mrb[1].mxu0 }
 0xf14   : > { %v3073_v62 = vpop.f32.mrb[2].mxu0 }
 0xf15   : > { %v3076_v63 = vsel %vm2940_vm10, %v3071_v61, 0.0  ;;  %v3660_v0 = vpop.f32.mrb[3].mxu0 }
 0xf16   : > { %3077 = vst [vmem:[%s4614_s5] sm:$0xff] %v3076_v63 }
 0xf17 PF: > { %s4615_s0 = sld [smem:[#allocation3_spill]] }
 0xf1d   : > { %s26_s21 = sadd.s32 1, %s4615_s0  }
 0xf1e   : > { %p23_p6 = scmp.ge.s32.totalorder %s26_s21, 4  }
 0xf20   :  { %25 = sbr.rel (!%p23_p6) target bundleno = 8 (0x8), region = 142 }

</bundles_post_ra>
